<compile_context>
chip_gen: v5e
topology: v5e:2x2
jax: 0.10.0
libtpu: 0.0.40
codegen_flags: <defaults>
</compile_context>

<pallas_src>
import jax
import jax.numpy as jnp
from jax import lax
from jax.experimental import pallas as pl
from jax.experimental.pallas import tpu as pltpu

NEG_BIAS = -1e30  # additive mask for non-edges (finite, exp underflows to 0)


def _leaky_relu(x, slope=0.2):
    return jnp.where(x >= 0, x, slope * x)


def _elu(x):
    return jnp.where(x > 0, x, jnp.exp(x) - 1.0)


def make_gat_chess_kernel(tbn, heads, c1):
    """One grid step = TB boards fused into a block-diagonal graph of tbn nodes."""

    def kernel(x_ref, xT_ref, adj_ref, w1_ref, wd1_ref, ws1T_ref, b1_ref,
               w2_ref, a2s_ref, a2d_ref, b2_ref, out_ref, y1_ref):
        # TODO(synk): F.dropout / GATConv attention-dropout are identity in eval
        # mode; training-mode stochastic dropout would need pltpu.prng_*.
        x = x_ref[0]               # [tbn, F]   (TB boards stacked on sublanes)
        xT = xT_ref[0]             # [F, tbn]   (pre-transposed in wrapper)
        bias = adj_ref[...]        # [tbn, tbn] block-diag additive mask (0 / -1e30)

        # ---------------- layer 1: GATConv(F, c1, heads=heads) ----------------
        h = jnp.dot(x, w1_ref[...], preferred_element_type=jnp.float32)        # [tbn, H*C]
        # Attention coefficients with w1 folded in (wrapper precomputes
        # wd1=[F,H], ws1T=[H,F]); source coeffs come straight out in row
        # orientation from xT -> no relayout of h, no transposed contraction.
        a_dst = jnp.dot(x, wd1_ref[...], preferred_element_type=jnp.float32)   # [tbn, H]
        a_srcT = jnp.dot(ws1T_ref[...], xT,
                         preferred_element_type=jnp.float32)                   # [H, tbn]

        for hd in range(heads):
            col = a_dst[:, hd:hd + 1]            # [tbn, 1] destination coeff
            row = a_srcT[hd:hd + 1, :]           # [1, tbn] source coeff
            # Off-board / non-edge entries sit at ~-1e30; exp underflows them
            # to exactly 0, so no numerator where() is needed.  Safe because
            # every row has a self-loop (add_self_loops=True): the row max is
            # finite and the softmax denominator is strictly positive.
            s = _leaky_relu(col + row) + bias    # [tbn, tbn]
            m = jnp.max(s, axis=1, keepdims=True)
            p = jnp.exp(s - m)
            inv = pl.reciprocal(jnp.sum(p, axis=1, keepdims=True), approx=True)
            attn = p * inv                       # softmax over source nodes
            hh = h[:, hd * c1:(hd + 1) * c1]     # [tbn, C]
            # Store each head's aggregation into the output slab (no concat).
            y1_ref[:, hd * c1:(hd + 1) * c1] = jnp.dot(
                attn, hh, preferred_element_type=jnp.float32)

        y1 = _elu(y1_ref[...] + b1_ref[...])     # [tbn, H*C]

        # ---------------- layer 2: GATConv(H*C, 1, heads=1) ----------------
        h2_col = jnp.dot(y1, w2_ref[...], preferred_element_type=jnp.float32)  # [tbn, 1]
        h2_row = lax.dot_general(                                               # [1, tbn]
            w2_ref[...], y1, (((0,), (1,)), ((), ())),
            preferred_element_type=jnp.float32)
        s2 = _leaky_relu(h2_col * a2d_ref[...] + h2_row * a2s_ref[...]) + bias
        m2 = jnp.max(s2, axis=1, keepdims=True)
        p2 = jnp.exp(s2 - m2)
        inv2 = pl.reciprocal(jnp.sum(p2, axis=1, keepdims=True), approx=True)
        attn2 = p2 * inv2                        # [tbn, tbn]
        # out_row[0, i] = sum_j attn2[i, j] * h2[j]  -> lane-dense [1, tbn] store.
        out_row = lax.dot_general(
            h2_row, attn2, (((1,), (1,)), ((), ())),
            preferred_element_type=jnp.float32)
        out_ref[...] = (out_row + b2_ref[...])[None, :, :].astype(out_ref.dtype)

    return kernel


def _block_attn_matrix(a):
    """[H, C] -> [H*C, H]: head h's a-vector placed in rows h*C:(h+1)*C of col h."""
    heads, out_c = a.shape
    eye = jnp.eye(heads, dtype=a.dtype)
    return (a[:, :, None] * eye[:, None, :]).reshape(heads * out_c, heads)


def _pick_tb(bsz, n):
    """Largest divisor of bsz with tb*n <= 256 (block-diag slab <= [256, 256])."""
    best = 1
    for tb in range(1, bsz + 1):
        if bsz % tb == 0 and tb * n <= 256:
            best = tb
    return best


def gat_chess_forward(x, adj, params, tb=None):
    """x: [B, N, F]; adj: [N, N] dense 0/1 adjacency (adj[i, j]=1 iff edge j->i,
    self-loops already included).  Returns per-node scores [B, N, 1]."""
    (w1, as1, ad1, b1, w2, as2, ad2, b2) = params
    bsz, n, f = x.shape
    h1, c1 = as1.shape
    h2, c2 = as2.shape
    assert (h2, c2) == (1, 1), "conv2 is GATConv(32*heads, 1, heads=1)"

    if tb is None:
        tb = _pick_tb(bsz, n)
    assert bsz % tb == 0
    steps = bsz // tb
    tbn = tb * n

    # Block-diagonal additive mask for TB boards fused into one graph.
    # NOTE: every destination row must contain a self-loop (add_self_loops=True)
    # so each softmax denominator is strictly positive.
    adj_small = (adj > 0).astype(jnp.float32)
    adj_big = jnp.kron(jnp.eye(tb, dtype=jnp.float32), adj_small)
    adj_bias = jnp.where(adj_big > 0, 0.0, NEG_BIAS).astype(jnp.float32)   # [tbn, tbn]

    # Fold w1 into the per-head attention vectors (linear, exact up to rounding).
    wd1 = (w1 @ _block_attn_matrix(ad1)).astype(jnp.float32)    # [F, H]
    ws1T = (w1 @ _block_attn_matrix(as1)).T.astype(jnp.float32)  # [H, F]
    a2s = as2.reshape(1, 1)
    a2d = ad2.reshape(1, 1)
    b1r = b1.reshape(1, h1 * c1)
    b2r = b2.reshape(1, 1)

    # TB boards per grid step, in two layouts (row-major and pre-transposed) so
    # the kernel never has to relayout activations for the src coefficients.
    x3 = x.reshape(steps, tbn, f).astype(jnp.float32)      # [steps, tbn, F]
    xT3 = jnp.swapaxes(x3, 1, 2)                           # [steps, F, tbn]

    kernel = make_gat_chess_kernel(tbn, h1, c1)

    def full_spec(shape):
        nd = len(shape)
        return pl.BlockSpec(shape, lambda i, _nd=nd: (0,) * _nd)

    out = pl.pallas_call(
        kernel,
        out_shape=jax.ShapeDtypeStruct((steps, 1, tbn), jnp.float32),
        grid=(steps,),
        in_specs=[
            pl.BlockSpec((1, tbn, f), lambda i: (i, 0, 0)),   # x: TB boards / step
            pl.BlockSpec((1, f, tbn), lambda i: (i, 0, 0)),   # x transposed
            full_spec(adj_bias.shape),                        # shared structure
            full_spec(w1.shape), full_spec(wd1.shape), full_spec(ws1T.shape),
            full_spec(b1r.shape),
            full_spec(w2.shape), full_spec(a2s.shape), full_spec(a2d.shape),
            full_spec(b2r.shape),
        ],
        out_specs=pl.BlockSpec((1, 1, tbn), lambda i: (i, 0, 0)),  # lane-dense rows
        scratch_shapes=[pltpu.VMEM((tbn, h1 * c1), jnp.float32)],  # layer-1 slab
        compiler_params=pltpu.CompilerParams(
            dimension_semantics=("parallel",)),                    # megacore split
    )(x3, xT3, adj_bias, w1, wd1, ws1T, b1r, w2, a2s, a2d, b2r)
    return out.reshape(bsz, n, 1)


# ---------------------------- pure-JAX reference ----------------------------
def _gat_layer_ref(h_in, w, a_src, a_dst, bias, adj_mask):
    heads, out_c = a_src.shape
    h = h_in @ w
    outs = []
    for hd in range(heads):
        hh = h[:, hd * out_c:(hd + 1) * out_c]
        e = _leaky_relu((hh @ a_dst[hd][:, None]) + (hh @ a_src[hd][:, None]).T)
        e = jnp.where(adj_mask, e, -jnp.inf)
        attn = jax.nn.softmax(e, axis=1)
        outs.append(attn @ hh)
    return jnp.concatenate(outs, axis=1) + bias


def gat_chess_ref(x, adj, params):
    (w1, as1, ad1, b1, w2, as2, ad2, b2) = params
    adj_mask = adj > 0
    outs = []
    for bi in range(x.shape[0]):
        y = _gat_layer_ref(x[bi], w1, as1, ad1, b1, adj_mask)
        y = _elu(y)
        y = _gat_layer_ref(y, w2, as2, ad2, b2, adj_mask)
        outs.append(y)
    return jnp.stack(outs, axis=0)       # [B, N, 1]


if __name__ == "__main__":
    key = jax.random.PRNGKey(0)
    B, N, F = 2, 16, 8        # boards, nodes, num_features
    H1, C1 = 8, 32            # conv1: GATConv(F, 32, heads=8)  -> [N, 256]
    H2, C2 = 1, 1             # conv2: GATConv(256, 1, heads=1) -> [N, 1]

    ks = jax.random.split(key, 8)
    x = jax.random.normal(ks[0], (B, N, F), jnp.float32)

    # Deterministic small "chess-like" graph: ring neighbours + stride-4 skips.
    idx = jnp.arange(N)
    src = jnp.concatenate([idx, idx, idx, idx])
    dst = jnp.concatenate([(idx + 1) % N, (idx - 1) % N,
                           (idx + 4) % N, (idx - 4) % N])
    adj = jnp.zeros((N, N), jnp.float32).at[dst, src].set(1.0)
    adj = jnp.maximum(adj, jnp.eye(N, dtype=jnp.float32))   # add_self_loops=True
    assert bool(jnp.all(jnp.diag(adj) > 0)), "softmax needs self-loops"

    def glorot(k, shape):
        lim = (6.0 / (shape[0] + shape[1])) ** 0.5
        return jax.random.uniform(k, shape, jnp.float32, -lim, lim)

    w1 = glorot(ks[1], (F, H1 * C1))
    as1 = glorot(ks[2], (H1, C1))
    ad1 = glorot(ks[3], (H1, C1))
    b1 = jnp.zeros((1, H1 * C1), jnp.float32)
    w2 = glorot(ks[4], (H1 * C1, H2 * C2))
    as2 = glorot(ks[5], (H2, C2))
    ad2 = glorot(ks[6], (H2, C2))
    b2 = jnp.zeros((1, H2 * C2), jnp.float32)
    params = (w1, as1, ad1, b1, w2, as2, ad2, b2)

    out = jax.jit(gat_chess_forward)(x, adj, params)
    out = jax.block_until_ready(out)

    ref = gat_chess_ref(x, adj, params)

    assert out.shape == (B, N, 1)
    assert bool(jnp.all(jnp.isfinite(out)))
    # pl.reciprocal(approx=True) in both softmaxes and the folded attention
    # weights trade a few mantissa bits; tolerance reflects that.
    assert jnp.allclose(out, ref, atol=2e-3, rtol=2e-3), \
        float(jnp.max(jnp.abs(out - ref)))
    print("KERNEL_OK")
</pallas_src>

<mosaic_0001>
module attributes {stable_mosaic.version = 11 : i64} {
  func.func @kernel(%arg0: i32, %arg1: memref<1x32x8xf32, #tpu.memory_space<vmem>>, %arg2: memref<1x8x32xf32, #tpu.memory_space<vmem>>, %arg3: memref<32x32xf32, #tpu.memory_space<vmem>>, %arg4: memref<8x256xf32, #tpu.memory_space<vmem>>, %arg5: memref<8x8xf32, #tpu.memory_space<vmem>>, %arg6: memref<8x8xf32, #tpu.memory_space<vmem>>, %arg7: memref<1x256xf32, #tpu.memory_space<vmem>>, %arg8: memref<256x1xf32, #tpu.memory_space<vmem>>, %arg9: memref<1x1xf32, #tpu.memory_space<vmem>>, %arg10: memref<1x1xf32, #tpu.memory_space<vmem>>, %arg11: memref<1x1xf32, #tpu.memory_space<vmem>>, %arg12: memref<1x1x32xf32, #tpu.memory_space<vmem>>, %arg13: memref<32x256xf32, #tpu.memory_space<vmem>>) attributes {dimension_semantics = [#tpu.dimension_semantics<parallel>], iteration_bounds = array<i64: 1>, scalar_prefetch = 0 : i64, scratch_operands = 1 : i64, tpu.core_type = #tpu.core_type<tc>, window_params = [{transform_indices = @transform_0, window_bounds = array<i64: 1, 32, 8>}, {transform_indices = @transform_1, window_bounds = array<i64: 1, 8, 32>}, {pipeline_mode = #tpu.pipeline_mode<synchronous>, transform_indices = @transform_2, window_bounds = array<i64: 32, 32>}, {pipeline_mode = #tpu.pipeline_mode<synchronous>, transform_indices = @transform_3, window_bounds = array<i64: 8, 256>}, {pipeline_mode = #tpu.pipeline_mode<synchronous>, transform_indices = @transform_4, window_bounds = array<i64: 8, 8>}, {pipeline_mode = #tpu.pipeline_mode<synchronous>, transform_indices = @transform_5, window_bounds = array<i64: 8, 8>}, {pipeline_mode = #tpu.pipeline_mode<synchronous>, transform_indices = @transform_6, window_bounds = array<i64: 1, 256>}, {pipeline_mode = #tpu.pipeline_mode<synchronous>, transform_indices = @transform_7, window_bounds = array<i64: 256, 1>}, {pipeline_mode = #tpu.pipeline_mode<synchronous>, transform_indices = @transform_8, window_bounds = array<i64: 1, 1>}, {pipeline_mode = #tpu.pipeline_mode<synchronous>, transform_indices = @transform_9, window_bounds = array<i64: 1, 1>}, {pipeline_mode = #tpu.pipeline_mode<synchronous>, transform_indices = @transform_10, window_bounds = array<i64: 1, 1>}, {transform_indices = @transform_11, window_bounds = array<i64: 1, 1, 32>}]} {
    %c0 = arith.constant 0 : index
    %c0_0 = arith.constant 0 : index
    %c0_1 = arith.constant 0 : index
    %0 = vector.load %arg1[%c0, %c0_0, %c0_1] : memref<1x32x8xf32, #tpu.memory_space<vmem>>, vector<1x32x8xf32>
    %1 = vector.shape_cast %0 : vector<1x32x8xf32> to vector<32x8xf32>
    %c0_2 = arith.constant 0 : index
    %c0_3 = arith.constant 0 : index
    %c0_4 = arith.constant 0 : index
    %2 = vector.load %arg2[%c0_2, %c0_3, %c0_4] : memref<1x8x32xf32, #tpu.memory_space<vmem>>, vector<1x8x32xf32>
    %3 = vector.shape_cast %2 : vector<1x8x32xf32> to vector<8x32xf32>
    %c0_5 = arith.constant 0 : index
    %c0_6 = arith.constant 0 : index
    %4 = vector.load %arg3[%c0_5, %c0_6] : memref<32x32xf32, #tpu.memory_space<vmem>>, vector<32x32xf32>
    %c0_7 = arith.constant 0 : index
    %c0_8 = arith.constant 0 : index
    %5 = vector.load %arg4[%c0_7, %c0_8] : memref<8x256xf32, #tpu.memory_space<vmem>>, vector<8x256xf32>
    %cst = arith.constant dense<0.000000e+00> : vector<32x256xf32>
    %6 = tpu.matmul %1, %5, %cst {dimension_numbers = #tpu.dot_dimension_numbers<[1], [0], [0], [1], [0, 0, 1, 1], [], []>} : vector<32x8xf32>, vector<8x256xf32>, vector<32x256xf32> -> vector<32x256xf32>
    %c0_9 = arith.constant 0 : index
    %c0_10 = arith.constant 0 : index
    %7 = vector.load %arg5[%c0_9, %c0_10] : memref<8x8xf32, #tpu.memory_space<vmem>>, vector<8x8xf32>
    %cst_11 = arith.constant dense<0.000000e+00> : vector<32x8xf32>
    %8 = tpu.matmul %1, %7, %cst_11 {dimension_numbers = #tpu.dot_dimension_numbers<[1], [0], [0], [1], [0, 0, 1, 1], [], []>} : vector<32x8xf32>, vector<8x8xf32>, vector<32x8xf32> -> vector<32x8xf32>
    %c0_12 = arith.constant 0 : index
    %c0_13 = arith.constant 0 : index
    %9 = vector.load %arg6[%c0_12, %c0_13] : memref<8x8xf32, #tpu.memory_space<vmem>>, vector<8x8xf32>
    %cst_14 = arith.constant dense<0.000000e+00> : vector<8x32xf32>
    %10 = tpu.matmul %9, %3, %cst_14 {dimension_numbers = #tpu.dot_dimension_numbers<[1], [0], [0], [1], [0, 0, 1, 1], [], []>} : vector<8x8xf32>, vector<8x32xf32>, vector<8x32xf32> -> vector<8x32xf32>
    %11 = vector.extract_strided_slice %8 {offsets = [0, 0], sizes = [32, 1], strides = [1, 1]} : vector<32x8xf32> to vector<32x1xf32>
    %12 = vector.extract_strided_slice %10 {offsets = [0, 0], sizes = [1, 32], strides = [1, 1]} : vector<8x32xf32> to vector<1x32xf32>
    %13 = vector.broadcast %11 : vector<32x1xf32> to vector<32x32xf32>
    %14 = vector.broadcast %12 : vector<1x32xf32> to vector<32x32xf32>
    %15 = arith.addf %13, %14 : vector<32x32xf32>
    %cst_15 = arith.constant 0.000000e+00 : f32
    %16 = vector.broadcast %cst_15 : f32 to vector<32x32xf32>
    %17 = arith.cmpf oge, %15, %16 : vector<32x32xf32>
    %cst_16 = arith.constant 2.000000e-01 : f32
    %18 = vector.broadcast %cst_16 : f32 to vector<32x32xf32>
    %19 = arith.mulf %18, %15 : vector<32x32xf32>
    %20 = arith.select %17, %15, %19 : vector<32x32xi1>, vector<32x32xf32>
    %21 = arith.addf %20, %4 : vector<32x32xf32>
    %cst_17 = arith.constant dense<0xFF800000> : vector<32xf32>
    %22 = vector.multi_reduction <maximumf>, %21, %cst_17 [1] : vector<32x32xf32> to vector<32xf32>
    %23 = vector.shape_cast %22 : vector<32xf32> to vector<32x1xf32>
    %24 = vector.broadcast %23 : vector<32x1xf32> to vector<32x32xf32>
    %25 = arith.subf %21, %24 : vector<32x32xf32>
    %26 = math.exp %25 : vector<32x32xf32>
    %cst_18 = arith.constant dense<0.000000e+00> : vector<32xf32>
    %27 = vector.multi_reduction <add>, %26, %cst_18 [1] : vector<32x32xf32> to vector<32xf32>
    %28 = vector.shape_cast %27 : vector<32xf32> to vector<32x1xf32>
    %29 = tpu.reciprocal %28 {approx = true} : vector<32x1xf32> -> vector<32x1xf32>
    %30 = vector.broadcast %29 : vector<32x1xf32> to vector<32x32xf32>
    %31 = arith.mulf %26, %30 : vector<32x32xf32>
    %32 = vector.extract_strided_slice %6 {offsets = [0, 0], sizes = [32, 32], strides = [1, 1]} : vector<32x256xf32> to vector<32x32xf32>
    %cst_19 = arith.constant dense<0.000000e+00> : vector<32x32xf32>
    %33 = tpu.matmul %31, %32, %cst_19 {dimension_numbers = #tpu.dot_dimension_numbers<[1], [0], [0], [1], [0, 0, 1, 1], [], []>} : vector<32x32xf32>, vector<32x32xf32>, vector<32x32xf32> -> vector<32x32xf32>
    %c0_20 = arith.constant 0 : index
    %c0_21 = arith.constant 0 : index
    %34 = vector.load %arg13[%c0_20, %c0_21] : memref<32x256xf32, #tpu.memory_space<vmem>>, vector<32x32xf32>
    tpu.vector_store %arg13[%c0_20, %c0_21], %33 {strides = array<i32>} : memref<32x256xf32, #tpu.memory_space<vmem>>, vector<32x32xf32>,
    %35 = vector.extract_strided_slice %8 {offsets = [0, 1], sizes = [32, 1], strides = [1, 1]} : vector<32x8xf32> to vector<32x1xf32>
    %36 = vector.extract_strided_slice %10 {offsets = [1, 0], sizes = [1, 32], strides = [1, 1]} : vector<8x32xf32> to vector<1x32xf32>
    %37 = vector.broadcast %35 : vector<32x1xf32> to vector<32x32xf32>
    %38 = vector.broadcast %36 : vector<1x32xf32> to vector<32x32xf32>
    %39 = arith.addf %37, %38 : vector<32x32xf32>
    %cst_22 = arith.constant 0.000000e+00 : f32
    %40 = vector.broadcast %cst_22 : f32 to vector<32x32xf32>
    %41 = arith.cmpf oge, %39, %40 : vector<32x32xf32>
    %cst_23 = arith.constant 2.000000e-01 : f32
    %42 = vector.broadcast %cst_23 : f32 to vector<32x32xf32>
    %43 = arith.mulf %42, %39 : vector<32x32xf32>
    %44 = arith.select %41, %39, %43 : vector<32x32xi1>, vector<32x32xf32>
    %45 = arith.addf %44, %4 : vector<32x32xf32>
    %cst_24 = arith.constant dense<0xFF800000> : vector<32xf32>
    %46 = vector.multi_reduction <maximumf>, %45, %cst_24 [1] : vector<32x32xf32> to vector<32xf32>
    %47 = vector.shape_cast %46 : vector<32xf32> to vector<32x1xf32>
    %48 = vector.broadcast %47 : vector<32x1xf32> to vector<32x32xf32>
    %49 = arith.subf %45, %48 : vector<32x32xf32>
    %50 = math.exp %49 : vector<32x32xf32>
    %cst_25 = arith.constant dense<0.000000e+00> : vector<32xf32>
    %51 = vector.multi_reduction <add>, %50, %cst_25 [1] : vector<32x32xf32> to vector<32xf32>
    %52 = vector.shape_cast %51 : vector<32xf32> to vector<32x1xf32>
    %53 = tpu.reciprocal %52 {approx = true} : vector<32x1xf32> -> vector<32x1xf32>
    %54 = vector.broadcast %53 : vector<32x1xf32> to vector<32x32xf32>
    %55 = arith.mulf %50, %54 : vector<32x32xf32>
    %56 = vector.extract_strided_slice %6 {offsets = [0, 32], sizes = [32, 32], strides = [1, 1]} : vector<32x256xf32> to vector<32x32xf32>
    %cst_26 = arith.constant dense<0.000000e+00> : vector<32x32xf32>
    %57 = tpu.matmul %55, %56, %cst_26 {dimension_numbers = #tpu.dot_dimension_numbers<[1], [0], [0], [1], [0, 0, 1, 1], [], []>} : vector<32x32xf32>, vector<32x32xf32>, vector<32x32xf32> -> vector<32x32xf32>
    %c0_27 = arith.constant 0 : index
    %c32 = arith.constant 32 : index
    %58 = vector.load %arg13[%c0_27, %c32] : memref<32x256xf32, #tpu.memory_space<vmem>>, vector<32x32xf32>
    tpu.vector_store %arg13[%c0_27, %c32], %57 {strides = array<i32>} : memref<32x256xf32, #tpu.memory_space<vmem>>, vector<32x32xf32>,
    %59 = vector.extract_strided_slice %8 {offsets = [0, 2], sizes = [32, 1], strides = [1, 1]} : vector<32x8xf32> to vector<32x1xf32>
    %60 = vector.extract_strided_slice %10 {offsets = [2, 0], sizes = [1, 32], strides = [1, 1]} : vector<8x32xf32> to vector<1x32xf32>
    %61 = vector.broadcast %59 : vector<32x1xf32> to vector<32x32xf32>
    %62 = vector.broadcast %60 : vector<1x32xf32> to vector<32x32xf32>
    %63 = arith.addf %61, %62 : vector<32x32xf32>
    %cst_28 = arith.constant 0.000000e+00 : f32
    %64 = vector.broadcast %cst_28 : f32 to vector<32x32xf32>
    %65 = arith.cmpf oge, %63, %64 : vector<32x32xf32>
    %cst_29 = arith.constant 2.000000e-01 : f32
    %66 = vector.broadcast %cst_29 : f32 to vector<32x32xf32>
    %67 = arith.mulf %66, %63 : vector<32x32xf32>
    %68 = arith.select %65, %63, %67 : vector<32x32xi1>, vector<32x32xf32>
    %69 = arith.addf %68, %4 : vector<32x32xf32>
    %cst_30 = arith.constant dense<0xFF800000> : vector<32xf32>
    %70 = vector.multi_reduction <maximumf>, %69, %cst_30 [1] : vector<32x32xf32> to vector<32xf32>
    %71 = vector.shape_cast %70 : vector<32xf32> to vector<32x1xf32>
    %72 = vector.broadcast %71 : vector<32x1xf32> to vector<32x32xf32>
    %73 = arith.subf %69, %72 : vector<32x32xf32>
    %74 = math.exp %73 : vector<32x32xf32>
    %cst_31 = arith.constant dense<0.000000e+00> : vector<32xf32>
    %75 = vector.multi_reduction <add>, %74, %cst_31 [1] : vector<32x32xf32> to vector<32xf32>
    %76 = vector.shape_cast %75 : vector<32xf32> to vector<32x1xf32>
    %77 = tpu.reciprocal %76 {approx = true} : vector<32x1xf32> -> vector<32x1xf32>
    %78 = vector.broadcast %77 : vector<32x1xf32> to vector<32x32xf32>
    %79 = arith.mulf %74, %78 : vector<32x32xf32>
    %80 = vector.extract_strided_slice %6 {offsets = [0, 64], sizes = [32, 32], strides = [1, 1]} : vector<32x256xf32> to vector<32x32xf32>
    %cst_32 = arith.constant dense<0.000000e+00> : vector<32x32xf32>
    %81 = tpu.matmul %79, %80, %cst_32 {dimension_numbers = #tpu.dot_dimension_numbers<[1], [0], [0], [1], [0, 0, 1, 1], [], []>} : vector<32x32xf32>, vector<32x32xf32>, vector<32x32xf32> -> vector<32x32xf32>
    %c0_33 = arith.constant 0 : index
    %c64 = arith.constant 64 : index
    %82 = vector.load %arg13[%c0_33, %c64] : memref<32x256xf32, #tpu.memory_space<vmem>>, vector<32x32xf32>
    tpu.vector_store %arg13[%c0_33, %c64], %81 {strides = array<i32>} : memref<32x256xf32, #tpu.memory_space<vmem>>, vector<32x32xf32>,
    %83 = vector.extract_strided_slice %8 {offsets = [0, 3], sizes = [32, 1], strides = [1, 1]} : vector<32x8xf32> to vector<32x1xf32>
    %84 = vector.extract_strided_slice %10 {offsets = [3, 0], sizes = [1, 32], strides = [1, 1]} : vector<8x32xf32> to vector<1x32xf32>
    %85 = vector.broadcast %83 : vector<32x1xf32> to vector<32x32xf32>
    %86 = vector.broadcast %84 : vector<1x32xf32> to vector<32x32xf32>
    %87 = arith.addf %85, %86 : vector<32x32xf32>
    %cst_34 = arith.constant 0.000000e+00 : f32
    %88 = vector.broadcast %cst_34 : f32 to vector<32x32xf32>
    %89 = arith.cmpf oge, %87, %88 : vector<32x32xf32>
    %cst_35 = arith.constant 2.000000e-01 : f32
    %90 = vector.broadcast %cst_35 : f32 to vector<32x32xf32>
    %91 = arith.mulf %90, %87 : vector<32x32xf32>
    %92 = arith.select %89, %87, %91 : vector<32x32xi1>, vector<32x32xf32>
    %93 = arith.addf %92, %4 : vector<32x32xf32>
    %cst_36 = arith.constant dense<0xFF800000> : vector<32xf32>
    %94 = vector.multi_reduction <maximumf>, %93, %cst_36 [1] : vector<32x32xf32> to vector<32xf32>
    %95 = vector.shape_cast %94 : vector<32xf32> to vector<32x1xf32>
    %96 = vector.broadcast %95 : vector<32x1xf32> to vector<32x32xf32>
    %97 = arith.subf %93, %96 : vector<32x32xf32>
    %98 = math.exp %97 : vector<32x32xf32>
    %cst_37 = arith.constant dense<0.000000e+00> : vector<32xf32>
    %99 = vector.multi_reduction <add>, %98, %cst_37 [1] : vector<32x32xf32> to vector<32xf32>
    %100 = vector.shape_cast %99 : vector<32xf32> to vector<32x1xf32>
    %101 = tpu.reciprocal %100 {approx = true} : vector<32x1xf32> -> vector<32x1xf32>
    %102 = vector.broadcast %101 : vector<32x1xf32> to vector<32x32xf32>
    %103 = arith.mulf %98, %102 : vector<32x32xf32>
    %104 = vector.extract_strided_slice %6 {offsets = [0, 96], sizes = [32, 32], strides = [1, 1]} : vector<32x256xf32> to vector<32x32xf32>
    %cst_38 = arith.constant dense<0.000000e+00> : vector<32x32xf32>
    %105 = tpu.matmul %103, %104, %cst_38 {dimension_numbers = #tpu.dot_dimension_numbers<[1], [0], [0], [1], [0, 0, 1, 1], [], []>} : vector<32x32xf32>, vector<32x32xf32>, vector<32x32xf32> -> vector<32x32xf32>
    %c0_39 = arith.constant 0 : index
    %c96 = arith.constant 96 : index
    %106 = vector.load %arg13[%c0_39, %c96] : memref<32x256xf32, #tpu.memory_space<vmem>>, vector<32x32xf32>
    tpu.vector_store %arg13[%c0_39, %c96], %105 {strides = array<i32>} : memref<32x256xf32, #tpu.memory_space<vmem>>, vector<32x32xf32>,
    %107 = vector.extract_strided_slice %8 {offsets = [0, 4], sizes = [32, 1], strides = [1, 1]} : vector<32x8xf32> to vector<32x1xf32>
    %108 = vector.extract_strided_slice %10 {offsets = [4, 0], sizes = [1, 32], strides = [1, 1]} : vector<8x32xf32> to vector<1x32xf32>
    %109 = vector.broadcast %107 : vector<32x1xf32> to vector<32x32xf32>
    %110 = vector.broadcast %108 : vector<1x32xf32> to vector<32x32xf32>
    %111 = arith.addf %109, %110 : vector<32x32xf32>
    %cst_40 = arith.constant 0.000000e+00 : f32
    %112 = vector.broadcast %cst_40 : f32 to vector<32x32xf32>
    %113 = arith.cmpf oge, %111, %112 : vector<32x32xf32>
    %cst_41 = arith.constant 2.000000e-01 : f32
    %114 = vector.broadcast %cst_41 : f32 to vector<32x32xf32>
    %115 = arith.mulf %114, %111 : vector<32x32xf32>
    %116 = arith.select %113, %111, %115 : vector<32x32xi1>, vector<32x32xf32>
    %117 = arith.addf %116, %4 : vector<32x32xf32>
    %cst_42 = arith.constant dense<0xFF800000> : vector<32xf32>
    %118 = vector.multi_reduction <maximumf>, %117, %cst_42 [1] : vector<32x32xf32> to vector<32xf32>
    %119 = vector.shape_cast %118 : vector<32xf32> to vector<32x1xf32>
    %120 = vector.broadcast %119 : vector<32x1xf32> to vector<32x32xf32>
    %121 = arith.subf %117, %120 : vector<32x32xf32>
    %122 = math.exp %121 : vector<32x32xf32>
    %cst_43 = arith.constant dense<0.000000e+00> : vector<32xf32>
    %123 = vector.multi_reduction <add>, %122, %cst_43 [1] : vector<32x32xf32> to vector<32xf32>
    %124 = vector.shape_cast %123 : vector<32xf32> to vector<32x1xf32>
    %125 = tpu.reciprocal %124 {approx = true} : vector<32x1xf32> -> vector<32x1xf32>
    %126 = vector.broadcast %125 : vector<32x1xf32> to vector<32x32xf32>
    %127 = arith.mulf %122, %126 : vector<32x32xf32>
    %128 = vector.extract_strided_slice %6 {offsets = [0, 128], sizes = [32, 32], strides = [1, 1]} : vector<32x256xf32> to vector<32x32xf32>
    %cst_44 = arith.constant dense<0.000000e+00> : vector<32x32xf32>
    %129 = tpu.matmul %127, %128, %cst_44 {dimension_numbers = #tpu.dot_dimension_numbers<[1], [0], [0], [1], [0, 0, 1, 1], [], []>} : vector<32x32xf32>, vector<32x32xf32>, vector<32x32xf32> -> vector<32x32xf32>
    %c0_45 = arith.constant 0 : index
    %c128 = arith.constant 128 : index
    %130 = vector.load %arg13[%c0_45, %c128] : memref<32x256xf32, #tpu.memory_space<vmem>>, vector<32x32xf32>
    tpu.vector_store %arg13[%c0_45, %c128], %129 {strides = array<i32>} : memref<32x256xf32, #tpu.memory_space<vmem>>, vector<32x32xf32>,
    %131 = vector.extract_strided_slice %8 {offsets = [0, 5], sizes = [32, 1], strides = [1, 1]} : vector<32x8xf32> to vector<32x1xf32>
    %132 = vector.extract_strided_slice %10 {offsets = [5, 0], sizes = [1, 32], strides = [1, 1]} : vector<8x32xf32> to vector<1x32xf32>
    %133 = vector.broadcast %131 : vector<32x1xf32> to vector<32x32xf32>
    %134 = vector.broadcast %132 : vector<1x32xf32> to vector<32x32xf32>
    %135 = arith.addf %133, %134 : vector<32x32xf32>
    %cst_46 = arith.constant 0.000000e+00 : f32
    %136 = vector.broadcast %cst_46 : f32 to vector<32x32xf32>
    %137 = arith.cmpf oge, %135, %136 : vector<32x32xf32>
    %cst_47 = arith.constant 2.000000e-01 : f32
    %138 = vector.broadcast %cst_47 : f32 to vector<32x32xf32>
    %139 = arith.mulf %138, %135 : vector<32x32xf32>
    %140 = arith.select %137, %135, %139 : vector<32x32xi1>, vector<32x32xf32>
    %141 = arith.addf %140, %4 : vector<32x32xf32>
    %cst_48 = arith.constant dense<0xFF800000> : vector<32xf32>
    %142 = vector.multi_reduction <maximumf>, %141, %cst_48 [1] : vector<32x32xf32> to vector<32xf32>
    %143 = vector.shape_cast %142 : vector<32xf32> to vector<32x1xf32>
    %144 = vector.broadcast %143 : vector<32x1xf32> to vector<32x32xf32>
    %145 = arith.subf %141, %144 : vector<32x32xf32>
    %146 = math.exp %145 : vector<32x32xf32>
    %cst_49 = arith.constant dense<0.000000e+00> : vector<32xf32>
    %147 = vector.multi_reduction <add>, %146, %cst_49 [1] : vector<32x32xf32> to vector<32xf32>
    %148 = vector.shape_cast %147 : vector<32xf32> to vector<32x1xf32>
    %149 = tpu.reciprocal %148 {approx = true} : vector<32x1xf32> -> vector<32x1xf32>
    %150 = vector.broadcast %149 : vector<32x1xf32> to vector<32x32xf32>
    %151 = arith.mulf %146, %150 : vector<32x32xf32>
    %152 = vector.extract_strided_slice %6 {offsets = [0, 160], sizes = [32, 32], strides = [1, 1]} : vector<32x256xf32> to vector<32x32xf32>
    %cst_50 = arith.constant dense<0.000000e+00> : vector<32x32xf32>
    %153 = tpu.matmul %151, %152, %cst_50 {dimension_numbers = #tpu.dot_dimension_numbers<[1], [0], [0], [1], [0, 0, 1, 1], [], []>} : vector<32x32xf32>, vector<32x32xf32>, vector<32x32xf32> -> vector<32x32xf32>
    %c0_51 = arith.constant 0 : index
    %c160 = arith.constant 160 : index
    %154 = vector.load %arg13[%c0_51, %c160] : memref<32x256xf32, #tpu.memory_space<vmem>>, vector<32x32xf32>
    tpu.vector_store %arg13[%c0_51, %c160], %153 {strides = array<i32>} : memref<32x256xf32, #tpu.memory_space<vmem>>, vector<32x32xf32>,
    %155 = vector.extract_strided_slice %8 {offsets = [0, 6], sizes = [32, 1], strides = [1, 1]} : vector<32x8xf32> to vector<32x1xf32>
    %156 = vector.extract_strided_slice %10 {offsets = [6, 0], sizes = [1, 32], strides = [1, 1]} : vector<8x32xf32> to vector<1x32xf32>
    %157 = vector.broadcast %155 : vector<32x1xf32> to vector<32x32xf32>
    %158 = vector.broadcast %156 : vector<1x32xf32> to vector<32x32xf32>
    %159 = arith.addf %157, %158 : vector<32x32xf32>
    %cst_52 = arith.constant 0.000000e+00 : f32
    %160 = vector.broadcast %cst_52 : f32 to vector<32x32xf32>
    %161 = arith.cmpf oge, %159, %160 : vector<32x32xf32>
    %cst_53 = arith.constant 2.000000e-01 : f32
    %162 = vector.broadcast %cst_53 : f32 to vector<32x32xf32>
    %163 = arith.mulf %162, %159 : vector<32x32xf32>
    %164 = arith.select %161, %159, %163 : vector<32x32xi1>, vector<32x32xf32>
    %165 = arith.addf %164, %4 : vector<32x32xf32>
    %cst_54 = arith.constant dense<0xFF800000> : vector<32xf32>
    %166 = vector.multi_reduction <maximumf>, %165, %cst_54 [1] : vector<32x32xf32> to vector<32xf32>
    %167 = vector.shape_cast %166 : vector<32xf32> to vector<32x1xf32>
    %168 = vector.broadcast %167 : vector<32x1xf32> to vector<32x32xf32>
    %169 = arith.subf %165, %168 : vector<32x32xf32>
    %170 = math.exp %169 : vector<32x32xf32>
    %cst_55 = arith.constant dense<0.000000e+00> : vector<32xf32>
    %171 = vector.multi_reduction <add>, %170, %cst_55 [1] : vector<32x32xf32> to vector<32xf32>
    %172 = vector.shape_cast %171 : vector<32xf32> to vector<32x1xf32>
    %173 = tpu.reciprocal %172 {approx = true} : vector<32x1xf32> -> vector<32x1xf32>
    %174 = vector.broadcast %173 : vector<32x1xf32> to vector<32x32xf32>
    %175 = arith.mulf %170, %174 : vector<32x32xf32>
    %176 = vector.extract_strided_slice %6 {offsets = [0, 192], sizes = [32, 32], strides = [1, 1]} : vector<32x256xf32> to vector<32x32xf32>
    %cst_56 = arith.constant dense<0.000000e+00> : vector<32x32xf32>
    %177 = tpu.matmul %175, %176, %cst_56 {dimension_numbers = #tpu.dot_dimension_numbers<[1], [0], [0], [1], [0, 0, 1, 1], [], []>} : vector<32x32xf32>, vector<32x32xf32>, vector<32x32xf32> -> vector<32x32xf32>
    %c0_57 = arith.constant 0 : index
    %c192 = arith.constant 192 : index
    %178 = vector.load %arg13[%c0_57, %c192] : memref<32x256xf32, #tpu.memory_space<vmem>>, vector<32x32xf32>
    tpu.vector_store %arg13[%c0_57, %c192], %177 {strides = array<i32>} : memref<32x256xf32, #tpu.memory_space<vmem>>, vector<32x32xf32>,
    %179 = vector.extract_strided_slice %8 {offsets = [0, 7], sizes = [32, 1], strides = [1, 1]} : vector<32x8xf32> to vector<32x1xf32>
    %180 = vector.extract_strided_slice %10 {offsets = [7, 0], sizes = [1, 32], strides = [1, 1]} : vector<8x32xf32> to vector<1x32xf32>
    %181 = vector.broadcast %179 : vector<32x1xf32> to vector<32x32xf32>
    %182 = vector.broadcast %180 : vector<1x32xf32> to vector<32x32xf32>
    %183 = arith.addf %181, %182 : vector<32x32xf32>
    %cst_58 = arith.constant 0.000000e+00 : f32
    %184 = vector.broadcast %cst_58 : f32 to vector<32x32xf32>
    %185 = arith.cmpf oge, %183, %184 : vector<32x32xf32>
    %cst_59 = arith.constant 2.000000e-01 : f32
    %186 = vector.broadcast %cst_59 : f32 to vector<32x32xf32>
    %187 = arith.mulf %186, %183 : vector<32x32xf32>
    %188 = arith.select %185, %183, %187 : vector<32x32xi1>, vector<32x32xf32>
    %189 = arith.addf %188, %4 : vector<32x32xf32>
    %cst_60 = arith.constant dense<0xFF800000> : vector<32xf32>
    %190 = vector.multi_reduction <maximumf>, %189, %cst_60 [1] : vector<32x32xf32> to vector<32xf32>
    %191 = vector.shape_cast %190 : vector<32xf32> to vector<32x1xf32>
    %192 = vector.broadcast %191 : vector<32x1xf32> to vector<32x32xf32>
    %193 = arith.subf %189, %192 : vector<32x32xf32>
    %194 = math.exp %193 : vector<32x32xf32>
    %cst_61 = arith.constant dense<0.000000e+00> : vector<32xf32>
    %195 = vector.multi_reduction <add>, %194, %cst_61 [1] : vector<32x32xf32> to vector<32xf32>
    %196 = vector.shape_cast %195 : vector<32xf32> to vector<32x1xf32>
    %197 = tpu.reciprocal %196 {approx = true} : vector<32x1xf32> -> vector<32x1xf32>
    %198 = vector.broadcast %197 : vector<32x1xf32> to vector<32x32xf32>
    %199 = arith.mulf %194, %198 : vector<32x32xf32>
    %200 = vector.extract_strided_slice %6 {offsets = [0, 224], sizes = [32, 32], strides = [1, 1]} : vector<32x256xf32> to vector<32x32xf32>
    %cst_62 = arith.constant dense<0.000000e+00> : vector<32x32xf32>
    %201 = tpu.matmul %199, %200, %cst_62 {dimension_numbers = #tpu.dot_dimension_numbers<[1], [0], [0], [1], [0, 0, 1, 1], [], []>} : vector<32x32xf32>, vector<32x32xf32>, vector<32x32xf32> -> vector<32x32xf32>
    %c0_63 = arith.constant 0 : index
    %c224 = arith.constant 224 : index
    %202 = vector.load %arg13[%c0_63, %c224] : memref<32x256xf32, #tpu.memory_space<vmem>>, vector<32x32xf32>
    tpu.vector_store %arg13[%c0_63, %c224], %201 {strides = array<i32>} : memref<32x256xf32, #tpu.memory_space<vmem>>, vector<32x32xf32>,
    %c0_64 = arith.constant 0 : index
    %c0_65 = arith.constant 0 : index
    %203 = vector.load %arg13[%c0_64, %c0_65] : memref<32x256xf32, #tpu.memory_space<vmem>>, vector<32x256xf32>
    %c0_66 = arith.constant 0 : index
    %c0_67 = arith.constant 0 : index
    %204 = vector.load %arg7[%c0_66, %c0_67] : memref<1x256xf32, #tpu.memory_space<vmem>>, vector<1x256xf32>
    %205 = vector.broadcast %204 : vector<1x256xf32> to vector<32x256xf32>
    %206 = arith.addf %203, %205 : vector<32x256xf32>
    %cst_68 = arith.constant 0.000000e+00 : f32
    %207 = vector.broadcast %cst_68 : f32 to vector<32x256xf32>
    %208 = arith.cmpf ogt, %206, %207 : vector<32x256xf32>
    %209 = math.exp %206 : vector<32x256xf32>
    %cst_69 = arith.constant 1.000000e+00 : f32
    %210 = vector.broadcast %cst_69 : f32 to vector<32x256xf32>
    %211 = arith.subf %209, %210 : vector<32x256xf32>
    %212 = arith.select %208, %206, %211 : vector<32x256xi1>, vector<32x256xf32>
    %c0_70 = arith.constant 0 : index
    %c0_71 = arith.constant 0 : index
    %213 = vector.load %arg8[%c0_70, %c0_71] : memref<256x1xf32, #tpu.memory_space<vmem>>, vector<256x1xf32>
    %cst_72 = arith.constant dense<0.000000e+00> : vector<32x1xf32>
    %214 = tpu.matmul %212, %213, %cst_72 {dimension_numbers = #tpu.dot_dimension_numbers<[1], [0], [0], [1], [0, 0, 1, 1], [], []>} : vector<32x256xf32>, vector<256x1xf32>, vector<32x1xf32> -> vector<32x1xf32>
    %c0_73 = arith.constant 0 : index
    %c0_74 = arith.constant 0 : index
    %215 = vector.load %arg8[%c0_73, %c0_74] : memref<256x1xf32, #tpu.memory_space<vmem>>, vector<256x1xf32>
    %cst_75 = arith.constant dense<0.000000e+00> : vector<1x32xf32>
    %216 = tpu.matmul %215, %212, %cst_75 {dimension_numbers = #tpu.dot_dimension_numbers<[0], [1], [1], [0], [0, 1, 1, 0], [], []>} : vector<256x1xf32>, vector<32x256xf32>, vector<1x32xf32> -> vector<1x32xf32>
    %c0_76 = arith.constant 0 : index
    %c0_77 = arith.constant 0 : index
    %217 = vector.load %arg10[%c0_76, %c0_77] : memref<1x1xf32, #tpu.memory_space<vmem>>, vector<1x1xf32>
    %218 = vector.broadcast %217 : vector<1x1xf32> to vector<32x1xf32>
    %219 = arith.mulf %214, %218 : vector<32x1xf32>
    %c0_78 = arith.constant 0 : index
    %c0_79 = arith.constant 0 : index
    %220 = vector.load %arg9[%c0_78, %c0_79] : memref<1x1xf32, #tpu.memory_space<vmem>>, vector<1x1xf32>
    %221 = vector.broadcast %220 : vector<1x1xf32> to vector<1x32xf32>
    %222 = arith.mulf %216, %221 : vector<1x32xf32>
    %223 = vector.broadcast %219 : vector<32x1xf32> to vector<32x32xf32>
    %224 = vector.broadcast %222 : vector<1x32xf32> to vector<32x32xf32>
    %225 = arith.addf %223, %224 : vector<32x32xf32>
    %cst_80 = arith.constant 0.000000e+00 : f32
    %226 = vector.broadcast %cst_80 : f32 to vector<32x32xf32>
    %227 = arith.cmpf oge, %225, %226 : vector<32x32xf32>
    %cst_81 = arith.constant 2.000000e-01 : f32
    %228 = vector.broadcast %cst_81 : f32 to vector<32x32xf32>
    %229 = arith.mulf %228, %225 : vector<32x32xf32>
    %230 = arith.select %227, %225, %229 : vector<32x32xi1>, vector<32x32xf32>
    %231 = arith.addf %230, %4 : vector<32x32xf32>
    %cst_82 = arith.constant dense<0xFF800000> : vector<32xf32>
    %232 = vector.multi_reduction <maximumf>, %231, %cst_82 [1] : vector<32x32xf32> to vector<32xf32>
    %233 = vector.shape_cast %232 : vector<32xf32> to vector<32x1xf32>
    %234 = vector.broadcast %233 : vector<32x1xf32> to vector<32x32xf32>
    %235 = arith.subf %231, %234 : vector<32x32xf32>
    %236 = math.exp %235 : vector<32x32xf32>
    %cst_83 = arith.constant dense<0.000000e+00> : vector<32xf32>
    %237 = vector.multi_reduction <add>, %236, %cst_83 [1] : vector<32x32xf32> to vector<32xf32>
    %238 = vector.shape_cast %237 : vector<32xf32> to vector<32x1xf32>
    %239 = tpu.reciprocal %238 {approx = true} : vector<32x1xf32> -> vector<32x1xf32>
    %240 = vector.broadcast %239 : vector<32x1xf32> to vector<32x32xf32>
    %241 = arith.mulf %236, %240 : vector<32x32xf32>
    %cst_84 = arith.constant dense<0.000000e+00> : vector<1x32xf32>
    %242 = tpu.matmul %216, %241, %cst_84 {dimension_numbers = #tpu.dot_dimension_numbers<[1], [1], [0], [0], [0, 0, 1, 0], [], []>} : vector<1x32xf32>, vector<32x32xf32>, vector<1x32xf32> -> vector<1x32xf32>
    %c0_85 = arith.constant 0 : index
    %c0_86 = arith.constant 0 : index
    %243 = vector.load %arg11[%c0_85, %c0_86] : memref<1x1xf32, #tpu.memory_space<vmem>>, vector<1x1xf32>
    %244 = vector.broadcast %243 : vector<1x1xf32> to vector<1x32xf32>
    %245 = arith.addf %242, %244 : vector<1x32xf32>
    %246 = vector.shape_cast %245 : vector<1x32xf32> to vector<1x1x32xf32>
    %c0_87 = arith.constant 0 : index
    %c0_88 = arith.constant 0 : index
    %c0_89 = arith.constant 0 : index
    %247 = vector.load %arg12[%c0_87, %c0_88, %c0_89] : memref<1x1x32xf32, #tpu.memory_space<vmem>>, vector<1x1x32xf32>
    tpu.vector_store %arg12[%c0_87, %c0_88, %c0_89], %246 {strides = array<i32>} : memref<1x1x32xf32, #tpu.memory_space<vmem>>, vector<1x1x32xf32>,
    return
  }
  func.func @transform_0(%arg0: i32) -> (i32, i32, i32) {
    %c0_i32 = arith.constant 0 : i32
    %c0_i32_0 = arith.constant 0 : i32
    %c0_i32_1 = arith.constant 0 : i32
    return %arg0, %c0_i32, %c0_i32_0 : i32, i32, i32
  }
  func.func @transform_1(%arg0: i32) -> (i32, i32, i32) {
    %c0_i32 = arith.constant 0 : i32
    %c0_i32_0 = arith.constant 0 : i32
    %c0_i32_1 = arith.constant 0 : i32
    return %arg0, %c0_i32, %c0_i32_0 : i32, i32, i32
  }
  func.func @transform_2(%arg0: i32) -> (i32, i32) {
    %c0_i32 = arith.constant 0 : i32
    %c0_i32_0 = arith.constant 0 : i32
    %c0_i32_1 = arith.constant 0 : i32
    return %c0_i32, %c0_i32_0 : i32, i32
  }
  func.func @transform_3(%arg0: i32) -> (i32, i32) {
    %c0_i32 = arith.constant 0 : i32
    %c0_i32_0 = arith.constant 0 : i32
    %c0_i32_1 = arith.constant 0 : i32
    return %c0_i32, %c0_i32_0 : i32, i32
  }
  func.func @transform_4(%arg0: i32) -> (i32, i32) {
    %c0_i32 = arith.constant 0 : i32
    %c0_i32_0 = arith.constant 0 : i32
    %c0_i32_1 = arith.constant 0 : i32
    return %c0_i32, %c0_i32_0 : i32, i32
  }
  func.func @transform_5(%arg0: i32) -> (i32, i32) {
    %c0_i32 = arith.constant 0 : i32
    %c0_i32_0 = arith.constant 0 : i32
    %c0_i32_1 = arith.constant 0 : i32
    return %c0_i32, %c0_i32_0 : i32, i32
  }
  func.func @transform_6(%arg0: i32) -> (i32, i32) {
    %c0_i32 = arith.constant 0 : i32
    %c0_i32_0 = arith.constant 0 : i32
    %c0_i32_1 = arith.constant 0 : i32
    return %c0_i32, %c0_i32_0 : i32, i32
  }
  func.func @transform_7(%arg0: i32) -> (i32, i32) {
    %c0_i32 = arith.constant 0 : i32
    %c0_i32_0 = arith.constant 0 : i32
    %c0_i32_1 = arith.constant 0 : i32
    return %c0_i32, %c0_i32_0 : i32, i32
  }
  func.func @transform_8(%arg0: i32) -> (i32, i32) {
    %c0_i32 = arith.constant 0 : i32
    %c0_i32_0 = arith.constant 0 : i32
    %c0_i32_1 = arith.constant 0 : i32
    return %c0_i32, %c0_i32_0 : i32, i32
  }
  func.func @transform_9(%arg0: i32) -> (i32, i32) {
    %c0_i32 = arith.constant 0 : i32
    %c0_i32_0 = arith.constant 0 : i32
    %c0_i32_1 = arith.constant 0 : i32
    return %c0_i32, %c0_i32_0 : i32, i32
  }
  func.func @transform_10(%arg0: i32) -> (i32, i32) {
    %c0_i32 = arith.constant 0 : i32
    %c0_i32_0 = arith.constant 0 : i32
    %c0_i32_1 = arith.constant 0 : i32
    return %c0_i32, %c0_i32_0 : i32, i32
  }
  func.func @transform_11(%arg0: i32) -> (i32, i32, i32) {
    %c0_i32 = arith.constant 0 : i32
    %c0_i32_0 = arith.constant 0 : i32
    %c0_i32_1 = arith.constant 0 : i32
    return %arg0, %c0_i32, %c0_i32_0 : i32, i32, i32
  }
}

</mosaic_0001>

<bundles_post_ra>
// kernel: gat_chess_forward.1
= control target key start
LH: loop header
LB: loop body
LE: loop exit
PB: predicated region body
PF: predicated region fallthrough
CT: control target
= control target key end

     0   :  { %vm55_vm0 = vcmask 64512   ;;  %v2148_v8 = vmov 7   ;;  %v2149_v9 = vmov 3   ;;  %v2150_v10 = vmov 2   ;;  %s2157_s20 = smov 64   ;;  %s2158_s21 = smov 32   ;;  %s3176_s3 = inlined_call_operand.vmem [shape: f32[8,256], index: 3, kind: input, shape index: {}]   ;;  %s3177_s0 = inlined_call_operand.vmem [shape: f32[1,32,8], index: 0, kind: input, shape index: {}]   ;;  %s3178_s4 = inlined_call_operand.vmem [shape: f32[8,8], index: 4, kind: input, shape index: {}]   ;;  %s3179_s1 = inlined_call_operand.vmem [shape: f32[1,8,32], index: 1, kind: input, shape index: {}]   ;;  %s3180_s5 = inlined_call_operand.vmem [shape: f32[8,8], index: 5, kind: input, shape index: {}]   ;;  %s3181_s2 = inlined_call_operand.vmem [shape: f32[32,32], index: 2, kind: input, shape index: {}]   ;;  %s3182_s7 = inlined_call_operand.vmem [shape: f32[256,1], index: 7, kind: input, shape index: {}]   ;;  %s3183_s6 = inlined_call_operand.vmem [shape: f32[1,256], index: 6, kind: input, shape index: {}]   ;;  %s3184_s9 = inlined_call_operand.<no memory space> [shape: f32[1,1], index: 9, kind: input, shape index: {}]   ;;  %s3185_s8 = inlined_call_operand.<no memory space> [shape: f32[1,1], index: 8, kind: input, shape index: {}]   ;;  %s3186_s10 = inlined_call_operand.<no memory space> [shape: f32[1,1], index: 10, kind: input, shape index: {}]   ;;  %s3187_s11 = inlined_call_operand.vmem [shape: f32[1,1,32], index: 11, kind: output, shape index: {}]  }
   0x1   :  { %v53_v0 = vld [vmem:[%s3176_s3] sm:$0xff]  ;;  %v2227_v1 = vld [vmem:[%s3177_s0 + $0x18] sm:$0xff]  ;;  %v2232_v2 = vld [vmem:[%s3177_s0 + $0x10] sm:$0xff]  ;;  %1893 = vset.pattern.permute.xlu2 %v2148_v8  ;;  %1890 = vset.pattern.permute.xlu0 %v2149_v9  ;;  %v2151_v14 = vmov 6   ;;  %v2152_v15 = vmov 5   ;;  %v2153_v16 = vmov 1  }
   0x2   :  { %1836 = vmatpush.msra.mxu2 %v53_v0  ;;  %1835 = vmatpush.msra.mxu1 %v53_v0  ;;  %v126_v3 = vld [vmem:[%s3178_s4] sm:$0xff]  ;;  %v2260_v7 = vld [vmem:[%s3177_s0 + $0x8] sm:$0xff]  ;;  %v2154_v18 = vmov 4   ;;  %v2155_v19 = vmov 0   ;;  %vm221_vm3 = vcmask 261120  }
   0x3   :  { %1780 = vmatmul.msk.f32.vlgmr.msra.gmra.mxu2 %vm55_vm0, %v2227_v1  ;;  %1779 = vmatmul.msk.f32.vlgmr.msra.gmra.mxu1 %vm55_vm0, %v2232_v2  ;;  %v48_v4 = vld [vmem:[%s3179_s1] sm:$0xff] }
   0x4   :  { %v156_v5 = vld [vmem:[%s3180_s5] sm:$0xff]  ;;  %142 = vmatpush.msra.mxu2 %v126_v3  ;;  %175 = vmatpush.msra.mxu3 %v48_v4 }
   0x5   :  { %v2250_v6 = vld [vmem:[%s3177_s0] sm:$0xff]  ;;  %1789 = vmatmul.msk.f32.vlgmr.msra.gmra.mxu3 %vm55_vm0, %v156_v5  ;;  %83 = vmatpush.msra.mxu0 %v53_v0 }
   0x6   :  { %1777 = vmatmul.msk.f32.vlgmr.msra.gmra.mxu0 %vm55_vm0, %v2250_v6  ;;  %1892 = vset.pattern.permute.xlu1 %v2150_v10  ;;  %v2324_v35 = vld [vmem:[%s3181_s2] sm:$0xff] }
   0xb   :  { %1785 = vmatmul.msk.f32.vlgmr.msra.gmra.mxu2 %vm55_vm0, %v2250_v6 }
   0xe   :  { %1778 = vmatmul.msk.f32.gmra.mxu0 %vm55_vm0, %v2260_v7 }
  0x13   :  { %1786 = vmatmul.msk.f32.gmra.mxu2 %vm55_vm0, %v2260_v7 }
  0x1b   :  { %1787 = vmatmul.msk.f32.gmra.mxu2 %vm55_vm0, %v2232_v2 }
  0x23   :  { %1788 = vmatmul.msk.f32.gmra.mxu2 %vm55_vm0, %v2227_v1 }
  0x80   :  { %v2276_v12 = vpop.f32.mrf.mxu1 }
  0x86   :  { %v2273_v11 = vpop.f32.mrf.mxu2 }
  0x87   :  { %290 = vmatpush.msrb.mxu3 %v2273_v11 }
  0x88   :  { %v2309_v24 = vpop.f32.mrf.mxu3 }
  0x89   :  { %291 = vmatpush.msrb.mxu3 %v2276_v12  ;;  %v2312_v26 = vperm.slane %v2309_v24, 7  ;;  %v2315_v27 = vperm.slane %v2309_v24, 3  ;;  %v2330_v38 = vperm.slane %v2309_v24, 1  ;;  %v2335_v43 = vperm.slane %v2309_v24, 2 }
  0x8a   :  { %v2343_v49 = vperm.slane %v2309_v24, 5  ;;  %v2353_v53 = vperm.slane %v2309_v24, 0  ;;  %v2363_v63 = vperm.slane %v2309_v24, 6 }
  0x8e   :  { %v144_v13 = vpop.f32.mrf.mxu2 }
  0x8f   :  { %1219 = vperm.xlu2 %1893, %v144_v13   ;;  %471 = vperm.xlu1 %1892, %v144_v13  }
  0x90   :  { %626 = vperm.xlu0 %1890, %v144_v13  }
  0x96   :  { %v147_v17 = vpop.f32.mrf.mxu2 }
  0x97   :  { %1896 = vset.pattern.permute.xlu2 %v2151_v14  ;;  %1895 = vset.pattern.permute.xlu1 %v2152_v15 }
  0x98   :  { %1891 = vset.pattern.permute.xlu0 %v2153_v16  ;;  %1065 = vperm.xlu2 %1896, %v144_v13  }
  0x99   :  { %907 = vperm.xlu1 %1895, %v144_v13   ;;  %312 = vperm.xlu0 %1891, %v144_v13  }
  0x9e   :  { %v2284_v20 = vpop.f32.mrf.mxu2 }
  0xa0   :  { %1899 = vset.pattern.permute.xlu2 %v2153_v16 }
  0xa1   :  { %1897 = vset.pattern.permute.xlu1 %v2154_v18  ;;  %1894 = vset.pattern.permute.xlu0 %v2155_v19 }
  0xa2   :  { %781 = vperm.xlu1 %1897, %v144_v13   ;;  %182 = vperm.xlu0 %1894, %v144_v13  }
  0xa3   :  { %316 = vperm.xlu2 %1899, %v147_v17  }
  0xa6   :  { %v2293_v21 = vpop.f32.mrf.mxu2 }
  0xaa   :  { %1898 = vset.pattern.permute.xlu1 %v2149_v9  ;;  %1903 = vset.pattern.permute.xlu0 %v2152_v15 }
  0xab   :  { %1900 = vset.pattern.permute.xlu2 %v2150_v10  ;;  %911 = vperm.xlu0 %1903, %v147_v17  }
  0xac   :  { %475 = vperm.xlu2 %1900, %v147_v17   ;;  %630 = vperm.xlu1 %1898, %v147_v17  }
  0xb3   :  { %1905 = vset.pattern.permute.xlu0 %v2154_v18 }
  0xb4   :  { %1902 = vset.pattern.permute.xlu2 %v2155_v19  ;;  %1901 = vset.pattern.permute.xlu1 %v2148_v8 }
  0xb5   :  { %785 = vperm.xlu0 %1905, %v147_v17   ;;  %187 = vperm.xlu2 %1902, %v147_v17  }
  0xb6   :  { %1223 = vperm.xlu1 %1901, %v147_v17  }
  0xbd   :  { %1908 = vset.pattern.permute.xlu0 %v2150_v10  ;;  %1907 = vset.pattern.permute.xlu2 %v2153_v16 }
  0xbe   :  { %1904 = vset.pattern.permute.xlu1 %v2151_v14  ;;  %479 = vperm.xlu0 %1908, %v2284_v20  }
  0xbf   :  { %1069 = vperm.xlu1 %1904, %v147_v17   ;;  %320 = vperm.xlu2 %1907, %v2284_v20  }
  0xc6   :  { %1911 = vset.pattern.permute.xlu0 %v2151_v14 }
  0xc7   :  { %1906 = vset.pattern.permute.xlu1 %v2149_v9  ;;  %1910 = vset.pattern.permute.xlu2 %v2152_v15 }
  0xc8   :  { %1073 = vperm.xlu0 %1911, %v2284_v20   ;;  %915 = vperm.xlu2 %1910, %v2284_v20  }
  0xc9   :  { %634 = vperm.xlu1 %1906, %v2284_v20  }
  0xd0   :  { %1917 = vset.pattern.permute.xlu0 %v2152_v15  ;;  %1914 = vset.pattern.permute.xlu2 %v2153_v16 }
  0xd1   :  { %1909 = vset.pattern.permute.xlu1 %v2148_v8  ;;  %919 = vperm.xlu0 %1917, %v2293_v21  }
  0xd2   :  { %1227 = vperm.xlu1 %1909, %v2284_v20   ;;  %324 = vperm.xlu2 %1914, %v2293_v21  }
  0xd9   :  { %1926 = vset.pattern.permute.xlu0 %v2155_v19 }
  0xda   :  { %1912 = vset.pattern.permute.xlu1 %v2154_v18  ;;  %1918 = vset.pattern.permute.xlu2 %v2151_v14 }
  0xdb   :  { %789 = vperm.xlu1 %1912, %v2284_v20   ;;  %1077 = vperm.xlu2 %1918, %v2293_v21  }
  0xe3   :  { %1913 = vset.pattern.permute.xlu1 %v2149_v9  ;;  %1982 = vset.pattern.permute.xlu2 %v2155_v19 }
  0xe4   :  { %638 = vperm.xlu1 %1913, %v2293_v21  }
  0xe9   :  { %v1220_v22 = vpop.permute.xlu2 %1219 }
  0xea   :  { %v1235_v30 = vadd.f32 %v2312_v26, %v1220_v22 }
  0xec   :  { %1915 = vset.pattern.permute.xlu1 %v2150_v10  ;;  %v1243_v33 = vmul.f32 0.2, %v1235_v30  ;;  %vm1239_vm2 = vcmp.ge.f32.partialorder %v1235_v30, 0.0 }
  0xed   :  { %483 = vperm.xlu1 %1915, %v2293_v21  }
  0xee   :  { %v1247_v42 = vsel %vm1239_vm2, %v1235_v30, %v1243_v33 }
  0xef   :  { %v2339_v46 = vadd.f32 %v1247_v42, %v2324_v35 }
  0xf1   :  { %v1255_v52 = vsel %vm221_vm3, %v2339_v46, -inf }
  0xf2   :  { %v1066_v23 = vpop.permute.xlu2 %1065 }
  0xf3   :  { %v1081_v13 = vadd.f32 %v2363_v63, %v1066_v23 }
  0xf5   :  { %1916 = vset.pattern.permute.xlu1 %v2148_v8  ;;  %vm1085_vm9 = vcmp.ge.f32.partialorder %v1081_v13, 0.0 }
  0xf6   :  { %1231 = vperm.xlu1 %1916, %v2293_v21  }
  0xfd   :  { %v317_v25 = vpop.permute.xlu2 %316 }
  0xfe   :  { %1919 = vset.pattern.permute.xlu1 %v2154_v18  ;;  %v329_v61 = vadd.f32 %v2330_v38, %v317_v25  ;;  %v2385_v25 = vld [vmem:[%s3181_s2 + $0x8] sm:$0xff] }
 0x100   :  { %v337_v9 = vmul.f32 0.2, %v329_v61  ;;  %vm333_vm8 = vcmp.ge.f32.partialorder %v329_v61, 0.0 }
 0x101   :  { %v472_v28 = vpop.permute.xlu1 %471 }
 0x102   :  { %v627_v29 = vpop.permute.xlu0 %626  ;;  %v487_v47 = vadd.f32 %v2335_v43, %v472_v28  ;;  %v341_v23 = vsel %vm333_vm8, %v329_v61, %v337_v9  ;;  %v1089_v28 = vmul.f32 0.2, %v1081_v13 }
 0x103   :  { %v642_v31 = vadd.f32 %v2315_v27, %v627_v29 }
 0x104   :  { %v495_v55 = vmul.f32 0.2, %v487_v47  ;;  %vm491_vm5 = vcmp.ge.f32.partialorder %v487_v47, 0.0 }
 0x105   :  { %vm646_vm1 = vcmp.ge.f32.partialorder %v642_v31, 0.0  ;;  %v650_v32 = vmul.f32 0.2, %v642_v31 }
 0x106   :  { %v2319_v34 = vpop.permute.xlu2 %475  ;;  %v499_v62 = vsel %vm491_vm5, %v487_v47, %v495_v55 }
 0x107   :  { %v654_v36 = vsel %vm646_vm1, %v642_v31, %v650_v32  ;;  %v2369_v8 = vadd.f32 %v499_v62, %v2324_v35  ;;  %v2391_v31 = vadd.f32 %v341_v23, %v2385_v25  ;;  %v488_v55 = vadd.f32 %v2335_v43, %v2319_v34 }
 0x108   :  { %v2327_v37 = vadd.f32 %v654_v36, %v2324_v35 }
 0x109   :  { %v507_v17 = vsel %vm221_vm3, %v2369_v8, -inf  ;;  %v496_v61 = vmul.f32 0.2, %v488_v55  ;;  %vm492_vm12 = vcmp.ge.f32.partialorder %v488_v55, 0.0 }
 0x10a   :  { %v662_v39 = vsel %vm221_vm3, %v2327_v37, -inf }
 0x10b   :  { %v908_v40 = vpop.permute.xlu1 %907  ;;  %v313_v41 = vpop.permute.xlu0 %312  ;;  %663 = vmax.xlane.f32.xlu2 %v662_v39  ;;  %v1093_v39 = vsel %vm1085_vm9, %v1081_v13, %v1089_v28  ;;  %v500_v34 = vsel %vm492_vm12, %v488_v55, %v496_v61 }
 0x10c   :  { %v328_v44 = vadd.f32 %v2330_v38, %v313_v41  ;;  %v923_v58 = vadd.f32 %v2343_v49, %v908_v40  ;;  %v351_v40 = vsel %vm221_vm3, %v2391_v31, -inf }
 0x10e   :  { %vm332_vm4 = vcmp.ge.f32.partialorder %v328_v44, 0.0  ;;  %v336_v45 = vmul.f32 0.2, %v328_v44  ;;  %v931_v0 = vmul.f32 0.2, %v923_v58  ;;  %vm927_vm7 = vcmp.ge.f32.partialorder %v923_v58, 0.0 }
 0x10f   :  { %v2345_v50 = vpop.permute.xlu2 %187 }
 0x110   :  { %v340_v48 = vsel %vm332_vm4, %v328_v44, %v336_v45  ;;  %v935_v14 = vsel %vm927_vm7, %v923_v58, %v931_v0  ;;  %v2401_v44 = vadd.f32 %v1093_v39, %v2324_v35  ;;  %v2406_v45 = vld [vmem:[%s3181_s2 + $0x10] sm:$0xff] }
 0x111   :  { %v2348_v51 = vadd.f32 %v340_v48, %v2324_v35  ;;  %v2380_v22 = vadd.f32 %v935_v14, %v2324_v35 }
 0x113   :  { %1256 = vmax.xlane.f32.xlu2 %v1255_v52  ;;  %v348_v54 = vsel %vm221_vm3, %v2348_v51, -inf  ;;  %v943_v33 = vsel %vm221_vm3, %v2380_v22, -inf }
 0x114   :  { %v2357_v56 = vpop.permute.xlu1 %781  ;;  %v183_v57 = vpop.permute.xlu0 %182  ;;  %349 = vmax.xlane.f32.xlu0 %v348_v54  ;;  %v1101_v54 = vsel %vm221_vm3, %v2401_v44, -inf }
 0x115   :  { %v201_v59 = vadd.f32 %v2353_v53, %v183_v57 }
 0x117   :  { %vm205_vm6 = vcmp.ge.f32.partialorder %v201_v59, 0.0  ;;  %v209_v60 = vmul.f32 0.2, %v201_v59 }
 0x119   :  { %v321_v3 = vpop.permute.xlu2 %320  ;;  %v213_v4 = vsel %vm205_vm6, %v201_v59, %v209_v60 }
 0x11a   :  { %v2366_v5 = vadd.f32 %v213_v4, %v2324_v35  ;;  %v330_v18 = vadd.f32 %v2330_v38, %v321_v3  ;;  %v2426_v4 = vadd.f32 %v500_v34, %v2385_v25 }
 0x11c   :  { %v222_v10 = vsel %vm221_vm3, %v2366_v5, -inf  ;;  %v338_v32 = vmul.f32 0.2, %v330_v18  ;;  %vm334_vm10 = vcmp.ge.f32.partialorder %v330_v18, 0.0 }
 0x11d   :  { %223 = vmax.xlane.f32.xlu2 %v222_v10  ;;  %v2374_v15 = vpop.permute.xlu0 %911 }
 0x11e   :  { %v631_v16 = vpop.permute.xlu1 %630  ;;  %v342_v47 = vsel %vm334_vm10, %v330_v18, %v338_v32  ;;  %v510_v18 = vsel %vm221_vm3, %v2426_v4, -inf }
 0x11f   :  { %v643_v36 = vadd.f32 %v2315_v27, %v631_v16  ;;  %v2409_v52 = vadd.f32 %v342_v47, %v2406_v45  ;;  %v202_v47 = vadd.f32 %v2353_v53, %v2345_v50 }
 0x120   :  { %508 = vmax.xlane.f32.xlu1 %v507_v17 }
 0x121   :  { %v651_v48 = vmul.f32 0.2, %v643_v36  ;;  %vm647_vm11 = vcmp.ge.f32.partialorder %v643_v36, 0.0  ;;  %v354_v58 = vsel %vm221_vm3, %v2409_v52, -inf  ;;  %vm206_vm2 = vcmp.ge.f32.partialorder %v202_v47, 0.0 }
 0x122   :  { %v916_v29 = vpop.permute.xlu2 %915 }
 0x123   :  { %v2388_v30 = vadd.f32 %v2343_v49, %v916_v29  ;;  %v655_v57 = vsel %vm647_vm11, %v643_v36, %v651_v48 }
 0x124   :  { %v2418_v60 = vadd.f32 %v655_v57, %v2385_v25  ;;  %v2453_v57 = vld [vmem:[%s3181_s2 + $0x18] sm:$0xff] }
 0x125   :  { %944 = vmax.xlane.f32.xlu2 %v943_v33 }
 0x126   :  { %v665_v0 = vsel %vm221_vm3, %v2418_v60, -inf }
 0x127   :  { %v2398_v41 = vpop.permute.xlu0 %785 }
 0x128   :  { %352 = vmax.xlane.f32.xlu1 %v351_v40  ;;  %v1224_v42 = vpop.permute.xlu1 %1223 }
 0x129   :  { %v1236_v3 = vadd.f32 %v2312_v26, %v1224_v42 }
 0x12b   :  { %v1244_v9 = vmul.f32 0.2, %v1236_v3  ;;  %vm1240_vm13 = vcmp.ge.f32.partialorder %v1236_v3, 0.0 }
 0x12c   :  { %v325_v13 = vpop.permute.xlu2 %324 }
 0x12d   :  { %1102 = vmax.xlane.f32.xlu2 %v1101_v54  ;;  %v331_v16 = vadd.f32 %v2330_v38, %v325_v13  ;;  %v1248_v28 = vsel %vm1240_vm13, %v1236_v3, %v1244_v9 }
 0x12e   :  { %v2434_v36 = vadd.f32 %v1248_v28, %v2385_v25 }
 0x12f   :  { %v339_v32 = vmul.f32 0.2, %v331_v16  ;;  %vm335_vm15 = vcmp.ge.f32.partialorder %v331_v16, 0.0 }
 0x130   :  { %355 = vmax.xlane.f32.xlu1 %v354_v58  ;;  %v480_v59 = vpop.permute.xlu0 %479  ;;  %v1258_v55 = vsel %vm221_vm3, %v2434_v36, -inf }
 0x131   :  { %v2420_v62 = vpop.permute.xlu1 %1069  ;;  %v489_v23 = vadd.f32 %v2335_v43, %v480_v59  ;;  %v343_v58 = vsel %vm335_vm15, %v331_v16, %v339_v32  ;;  %v924_v59 = vadd.f32 %v2343_v49, %v2374_v15  ;;  %vm929_vm15 = vcmp.ge.f32.partialorder %v2388_v30, 0.0 }
 0x132   :  { %v2458_v61 = vadd.f32 %v343_v58, %v2453_v57 }
 0x133   :  { %v497_v39 = vmul.f32 0.2, %v489_v23  ;;  %vm493_vm1 = vcmp.ge.f32.partialorder %v489_v23, 0.0  ;;  %v932_v34 = vmul.f32 0.2, %v924_v59  ;;  %vm928_vm4 = vcmp.ge.f32.partialorder %v924_v59, 0.0 }
 0x134   :  { %v357_v9 = vsel %vm221_vm3, %v2458_v61, -inf }
 0x135   :  { %666 = vmax.xlane.f32.xlu2 %v665_v0  ;;  %v501_v50 = vsel %vm493_vm1, %v489_v23, %v497_v39  ;;  %v210_v0 = vmul.f32 0.2, %v202_v47  ;;  %v936_v16 = vsel %vm928_vm4, %v924_v59, %v932_v34 }
 0x136   :  { %v2461_v3 = vadd.f32 %v501_v50, %v2406_v45  ;;  %v2474_v23 = vadd.f32 %v936_v16, %v2385_v25 }
 0x137   :  { %v214_v15 = vsel %vm206_vm2, %v202_v47, %v210_v0  ;;  %v54_v0 = vld [vmem:[%s3176_s3 + $0x8] sm:$0xff]  ;;  %s2156_s3 = smov 96  }
 0x138   :  { %v946_v28 = vsel %vm221_vm3, %v2474_v23, -inf  ;;  %112 = vmatpush.msra.mxu1 %v54_v0 }
 0x139   :  { %1781 = vmatmul.msk.f32.vlgmr.msra.gmra.mxu1 %vm55_vm0, %v2250_v6 }
 0x13a   :  { %v1074_v10 = vpop.permute.xlu0 %1073 }
 0x13b   :  { %v635_v14 = vpop.permute.xlu1 %634  ;;  %v1083_v13 = vadd.f32 %v2363_v63, %v1074_v10 }
 0x13c   :  { %v644_v17 = vadd.f32 %v2315_v27, %v635_v14 }
 0x13d   :  { %511 = vmax.xlane.f32.xlu2 %v510_v18  ;;  %v1091_v18 = vmul.f32 0.2, %v1083_v13  ;;  %vm1087_vm5 = vcmp.ge.f32.partialorder %v1083_v13, 0.0 }
 0x13e   :  { %vm648_vm14 = vcmp.ge.f32.partialorder %v644_v17, 0.0  ;;  %v652_v29 = vmul.f32 0.2, %v644_v17 }
 0x140   :  { %v656_v33 = vsel %vm648_vm14, %v644_v17, %v652_v29  ;;  %v2471_v17 = vadd.f32 %v214_v15, %v2385_v25  ;;  %v1095_v29 = vsel %vm1087_vm5, %v1083_v13, %v1091_v18  ;;  %vm465_vm5 = vcmask 523520  }
 0x141   :  { %v2437_v38 = vadd.f32 %v656_v33, %v2406_v45  ;;  %v2482_v39 = vadd.f32 %v1095_v29, %v2406_v45  ;;  %1782 = vmatmul.msk.f32.gmra.mxu1 %vm55_vm0, %v2260_v7 }
 0x142   :  { %v225_v10 = vsel %vm221_vm3, %v2471_v17, -inf }
 0x143   :  { %v668_v40 = vsel %vm221_vm3, %v2437_v38, -inf  ;;  %v920_v42 = vpop.permute.xlu0 %919 }
 0x144   :  { %v2443_v48 = vpop.permute.xlu1 %1227  ;;  %669 = vmax.xlane.f32.xlu0 %v668_v40  ;;  %v2446_v54 = vadd.f32 %v2343_v49, %v920_v42  ;;  %v513_v49 = vsel %vm221_vm3, %v2461_v3, -inf  ;;  %v1107_v42 = vsel %vm221_vm3, %v2482_v39, -inf }
 0x145   :  { %1259 = vmax.xlane.f32.xlu2 %v1258_v55 }
 0x146   :  { %vm930_vm11 = vcmp.ge.f32.partialorder %v2446_v54, 0.0 }
 0x149   :  { %1783 = vmatmul.msk.f32.gmra.mxu1 %vm55_vm0, %v2232_v2  ;;  %v1237_v2 = vadd.f32 %v2312_v26, %v2443_v48 }
 0x14c   :  { %358 = vmax.xlane.f32.xlu0 %v357_v9 }
 0x14d   :  { %v2468_v14 = vpop.permute.xlu1 %789  ;;  %514 = vmax.xlane.f32.xlu2 %v513_v49 }
 0x151   :  { %1784 = vmatmul.msk.f32.gmra.mxu1 %vm55_vm0, %v2227_v1  ;;  %vm1241_vm0 = vcmp.ge.f32.partialorder %v1237_v2, 0.0 }
 0x154   :  { %226 = vmax.xlane.f32.xlu0 %v225_v10 }
 0x155   :  { %947 = vmax.xlane.f32.xlu2 %v946_v28 }
 0x156   :  { %v639_v32 = vpop.permute.xlu1 %638 }
 0x157   :  { %v645_v33 = vadd.f32 %v2315_v27, %v639_v32  ;;  %v1082_v27 = vadd.f32 %v2363_v63, %v2420_v62 }
 0x159   :  { %vm649_vm6 = vcmp.ge.f32.partialorder %v645_v33, 0.0  ;;  %v653_v40 = vmul.f32 0.2, %v645_v33  ;;  %v1090_v9 = vmul.f32 0.2, %v1082_v27  ;;  %vm1086_vm8 = vcmp.ge.f32.partialorder %v1082_v27, 0.0 }
 0x15b   :  { %v657_v47 = vsel %vm649_vm6, %v645_v33, %v653_v40  ;;  %v1094_v15 = vsel %vm1086_vm8, %v1082_v27, %v1090_v9  ;;  %v2520_v33 = vpop.permute.xlu2 %1077  ;;  %v2530_v40 = vpack.i.bf16 %v2276_v12, %v2273_v11  ;;  %vm620_vm6 = vcmask 785920  }
 0x15c   :  { %1108 = vmax.xlane.f32.xlu0 %v1107_v42  ;;  %v2487_v55 = vadd.f32 %v657_v47, %v2453_v57  ;;  %v2506_v10 = vadd.f32 %v1094_v15, %v2385_v25 }
 0x15e   :  { %v671_v58 = vsel %vm221_vm3, %v2487_v55, -inf  ;;  %v1104_v29 = vsel %vm221_vm3, %v2506_v10, -inf }
 0x15f   :  { %672 = vmax.xlane.f32.xlu1 %v671_v58  ;;  %v484_v59 = vpop.permute.xlu1 %483 }
 0x160   :  { %v490_v50 = vadd.f32 %v2335_v43, %v484_v59 }
 0x162   :  { %vm494_vm7 = vcmp.ge.f32.partialorder %v490_v50, 0.0  ;;  %v498_v34 = vmul.f32 0.2, %v490_v50 }
 0x164   :  { %v502_v13 = vsel %vm494_vm7, %v490_v50, %v498_v34  ;;  %vm775_vm7 = vcmask 1048320  }
 0x165   :  { %v2500_v49 = vadd.f32 %v502_v13, %v2453_v57 }
 0x167   :  { %v516_v62 = vsel %vm221_vm3, %v2500_v49, -inf }
 0x168   :  { %517 = vmax.xlane.f32.xlu2 %v516_v62  ;;  %v1232_v43 = vpop.permute.xlu1 %1231 }
 0x169   :  { %v1238_v16 = vadd.f32 %v2312_v26, %v1232_v43 }
 0x16b   :  { %vm1242_vm9 = vcmp.ge.f32.partialorder %v1238_v16, 0.0  ;;  %v1246_v18 = vmul.f32 0.2, %v1238_v16 }
 0x16d   :  { %v1250_v6 = vsel %vm1242_vm9, %v1238_v16, %v1246_v18 }
 0x16e   :  { %v2511_v28 = vadd.f32 %v1250_v6, %v2453_v57 }
 0x170   :  { %1105 = vmax.xlane.f32.xlu2 %v1104_v29  ;;  %v1264_v32 = vsel %vm221_vm3, %v2511_v28, -inf }
 0x171   :  { %1265 = vmax.xlane.f32.xlu0 %v1264_v32 }
 0x178   :  { %793 = vperm.xlu1 %1919, %v2293_v21  }
 0x17e   :  { %v2525_v7 = vpop.xlane.xlu2 %663 }
 0x180   :  { %1920 = vset.pattern.permute.xlu1 %v2155_v19  ;;  %v1245_v19 = vmul.f32 0.2, %v1237_v2 }
 0x182   :  { %v1249_v11 = vsel %vm1241_vm0, %v1237_v2, %v1245_v19  ;;  %v2573_v19 = vperm.slane %v2309_v24, 4 }
 0x183   :  { %v2543_v12 = vadd.f32 %v1249_v11, %v2406_v45 }
 0x184   :  { %v797_v11 = vadd.f32 %v2573_v19, %v2357_v56 }
 0x185   :  { %197 = vperm.xlu0 %1926, %v2293_v21   ;;  %v85_v21 = vpop.f32.mrf.mxu0  ;;  %v1261_v59 = vsel %vm221_vm3, %v2543_v12, -inf }
 0x186   :  { %v2532_v42 = vpop.xlane.xlu2 %1256  ;;  %vm801_vm10 = vcmp.ge.f32.partialorder %v797_v11, 0.0 }
 0x187   :  { %v350_v48 = vpop.xlane.xlu0 %349 }
 0x188   :  { %v360_v27 = vsub.f32 %v2348_v51, %v350_v48 }
 0x18a   :  { %v364_v0 = vmul.f32 1.442695, %v360_v27 }
 0x18c   :  { %1984 = vpow2.f32 %v364_v0 }
 0x18d   :  { %1928 = vrot.lane.b32.xlu0 %v2530_v40, %s2156_s3  ;;  %v88_v58 = vpop.f32.mrf.mxu0 }
 0x18e   :  { %292 = vmatpush.msrb.mxu3 %v88_v58  ;;  %v2559_v51 = vpack.i.bf16 %v85_v21, %v88_v58 }
 0x190   :  { %v2538_v1 = vpop.xlane.xlu2 %223  ;;  %293 = vmatpush.msrb.mxu3 %v85_v21 }
 0x192   :  { %v2553_v43 = vpop.eup %1984 }
 0x193   :  { %v509_v50 = vpop.xlane.xlu1 %508  ;;  %v372_v16 = vsel %vm221_vm3, %v2553_v43, 0.0 }
 0x194   :  { %v519_v56 = vsub.f32 %v2369_v8, %v509_v50  ;;  %v798_v8 = vadd.f32 %v2573_v19, %v2398_v41 }
 0x195   :  { %1938 = vrot.lane.b32.xlu0 %v2530_v40, %s2157_s20 }
 0x196   :  { %vm802_vm12 = vcmp.ge.f32.partialorder %v798_v8, 0.0 }
 0x198   :  { %v2545_v47 = vpop.xlane.xlu2 %944 }
 0x19b   :  { %v353_v62 = vpop.xlane.xlu1 %352 }
 0x19c   :  { %v361_v15 = vsub.f32 %v2391_v31, %v353_v62 }
 0x19e   :  { %v366_v18 = vmul.f32 1.442695, %v361_v15 }
 0x1a0   :  { %v2549_v26 = vpop.xlane.xlu2 %1102 }
 0x1a2   :  { %1262 = vmax.xlane.f32.xlu1 %v1261_v59  ;;  %v805_v59 = vmul.f32 0.2, %v797_v11 }
 0x1a4   :  { %v809_v0 = vsel %vm801_vm10, %v797_v11, %v805_v59  ;;  %v806_v11 = vmul.f32 0.2, %v798_v8 }
 0x1a8   :  { %v667_v34 = vpop.xlane.xlu2 %666 }
 0x1a9   :  { %v675_v9 = vsub.f32 %v2418_v60, %v667_v34 }
 0x1ab   :  { %v680_v13 = vmul.f32 1.442695, %v675_v9 }
 0x1ad   :  { %1986 = vpow2.f32 %v680_v13  ;;  %v2585_v13 = vadd.f32 %v809_v0, %v2324_v35  ;;  %v810_v0 = vsel %vm802_vm12, %v798_v8, %v806_v11 }
 0x1ae   :  { %1988 = vpow2.f32 %v366_v18 }
 0x1b0   :  { %v512_v6 = vpop.xlane.xlu2 %511 }
 0x1b3   :  { %v2561_v29 = vpop.eup %1986 }
 0x1b4   :  { %v689_v31 = vsel %vm221_vm3, %v2561_v29, 0.0  ;;  %v2570_v2 = vpop.eup %1988 }
 0x1b5   :  { %v375_v21 = vsel %vm221_vm3, %v2570_v2, 0.0 }
 0x1b6   :  { %v2593_v18 = vpop.f32.mrf.mxu1 }
 0x1b7   :  { %v2568_v32 = vpop.xlane.xlu0 %669 }
 0x1bb   :  { %192 = vperm.xlu1 %1920, %v2284_v20   ;;  %v520_v20 = vsub.f32 %v2426_v4, %v512_v6  ;;  %v356_v4 = vpop.xlane.xlu1 %355 }
 0x1bc   :  { %v362_v27 = vsub.f32 %v2409_v52, %v356_v4  ;;  %v817_v52 = vsel %vm221_vm3, %v2585_v13, -inf }
 0x1bd   :  { %v525_v60 = vmul.f32 1.442695, %v520_v20 }
 0x1be   :  { %v368_v34 = vmul.f32 1.442695, %v362_v27 }
 0x1bf   :  { %373 = vadd.xlane.f32.xlu0 %v372_v16  ;;  %1990 = vpow2.f32 %v525_v60  ;;  %v359_v48 = vpop.xlane.xlu0 %358  ;;  %v523_v16 = vmul.f32 1.442695, %v519_v56  ;;  %v934_v60 = vmul.f32 0.2, %v2446_v54 }
 0x1c0   :  { %1992 = vpow2.f32 %v368_v34  ;;  %v363_v41 = vsub.f32 %v2458_v61, %v359_v48  ;;  %v799_v48 = vadd.f32 %v2573_v19, %v2468_v14 }
 0x1c1   :  { %1994 = vpow2.f32 %v523_v16  ;;  %v938_v59 = vsel %vm930_vm11, %v2446_v54, %v934_v60 }
 0x1c2   :  { %v2620_v34 = vadd.f32 %v938_v59, %v2453_v57  ;;  %v370_v56 = vmul.f32 1.442695, %v363_v41  ;;  %vm803_vm13 = vcmp.ge.f32.partialorder %v799_v48, 0.0 }
 0x1c3   :  { %1933 = vrot.lane.b32.xlu1 %v2559_v51, %s2158_s21 }
 0x1c4   :  { %v952_v61 = vsel %vm221_vm3, %v2620_v34, -inf }
 0x1c5   :  { %v2579_v58 = vpop.eup %1990 }
 0x1c6   :  { %v534_v24 = vsel %vm221_vm3, %v2579_v58, 0.0  ;;  %v2595_v20 = vpop.eup %1992 }
 0x1c7   :  { %690 = vadd.xlane.f32.xlu0 %v689_v31  ;;  %v2588_v62 = vpop.xlane.xlu0 %226  ;;  %v378_v35 = vsel %vm221_vm3, %v2595_v20, 0.0  ;;  %v2605_v31 = vpop.eup %1994 }
 0x1c8   :  { %v531_v4 = vsel %vm221_vm3, %v2605_v31, 0.0 }
 0x1cf   :  { %376 = vadd.xlane.f32.xlu0 %v375_v21  ;;  %v2601_v50 = vpop.xlane.xlu0 %1108 }
 0x1d2   :  { %v673_v9 = vpop.xlane.xlu1 %672 }
 0x1d3   :  { %v677_v15 = vsub.f32 %v2487_v55, %v673_v9  ;;  %v2603_v55 = vpop.f32.mrf.mxu1 }
 0x1d5   :  { %v684_v6 = vmul.f32 1.442695, %v677_v15  ;;  %v2623_v15 = vadd.f32 %v810_v0, %v2385_v25  ;;  %v807_v25 = vmul.f32 0.2, %v799_v48 }
 0x1d7   :  { %535 = vadd.xlane.f32.xlu0 %v534_v24  ;;  %1996 = vpow2.f32 %v684_v6  ;;  %v820_v54 = vsel %vm221_vm3, %v2623_v15, -inf  ;;  %v811_v60 = vsel %vm803_vm13, %v799_v48, %v807_v25 }
 0x1d8   :  { %1998 = vpow2.f32 %v370_v56 }
 0x1db   :  { %v120_v9 = vpop.f32.mrf.mxu1 }
 0x1dd   :  { %v2609_v21 = vpop.eup %1996 }
 0x1de   :  { %v695_v27 = vsel %vm221_vm3, %v2609_v21, 0.0  ;;  %v2633_v6 = vpop.eup %1998 }
 0x1df   :  { %818 = vmax.xlane.f32.xlu0 %v817_v52 }
 0x1e3   :  { %v123_v16 = vpop.f32.mrf.mxu1 }
 0x1e4   :  { %v2617_v24 = vpop.xlane.xlu0 %1265  ;;  %885 = vmatpush.msra.mxu3 %v123_v16  ;;  %v1952_v56 = vpack.i.bf16 %v120_v9, %v123_v16  ;;  %v933_v16 = vmul.f32 0.2, %v2388_v30 }
 0x1e6   :  { %886 = vmatpush.msra.mxu3 %v120_v9 }
 0x1e7   :  { %379 = vadd.xlane.f32.xlu0 %v378_v35  ;;  %v381_v35 = vsel %vm221_vm3, %v2633_v6, 0.0 }
 0x1e8   :  { %887 = vmatpush.msra.mxu3 %v2603_v55 }
 0x1ea   :  { %888 = vmatpush.msra.mxu3 %v2593_v18 }
 0x1ed   :  { %532 = vadd.xlane.f32.xlu1 %v531_v4  ;;  %v2640_v4 = vadd.f32 %v811_v60, %v2406_v45 }
 0x1ef   :  { %696 = vadd.xlane.f32.xlu0 %v695_v27  ;;  %v823_v41 = vsel %vm221_vm3, %v2640_v4, -inf }
 0x1f5   :  { %953 = vmax.xlane.f32.xlu1 %v952_v61  ;;  %v2646_v61 = vpop.xlane.xlu2 %1259 }
 0x1f7   :  { %v2631_v52 = vpop.permute.xlu0 %197  ;;  %821 = vmax.xlane.f32.xlu0 %v820_v54  ;;  %v794_v54 = vpop.permute.xlu1 %793 }
 0x1fd   :  { %v515_v48 = vpop.xlane.xlu2 %514 }
 0x1ff   :  { %v1929_v8 = vpop.permute.xlu0 %1928  ;;  %382 = vadd.xlane.f32.xlu0 %v381_v35  ;;  %v521_v35 = vsub.f32 %v2461_v3, %v515_v48 }
 0x200   :  { %v1930_v14 = vunpack.i.l.bf16 %v1929_v8  ;;  %v1931_v11 = vunpack.i.h.bf16 %v1929_v8 }
 0x201   :  { %v527_v8 = vmul.f32 1.442695, %v521_v35 }
 0x202   :  { %432 = vmatpush.msrb.mxu0 %v1930_v14  ;;  %v955_v14 = vsub.f32 %v2380_v22, %v2545_v47  ;;  %v937_v47 = vsel %vm929_vm15, %v2388_v30, %v933_v16 }
 0x203   :  { %2000 = vpow2.f32 %v527_v8 }
 0x204   :  { %433 = vmatpush.msrb.mxu0 %v1931_v11 }
 0x205   :  { %v948_v35 = vpop.xlane.xlu2 %947 }
 0x207   :  { %v1939_v59 = vpop.permute.xlu0 %1938  ;;  %824 = vmax.xlane.f32.xlu0 %v823_v41  ;;  %v959_v41 = vmul.f32 1.442695, %v955_v14  ;;  %v956_v14 = vsub.f32 %v2474_v23, %v948_v35  ;;  %v204_v35 = vadd.f32 %v2353_v53, %v2631_v52 }
 0x208   :  { %v1940_v27 = vunpack.i.l.bf16 %v1939_v59  ;;  %v1941_v0 = vunpack.i.h.bf16 %v1939_v59 }
 0x209   :  { %v2660_v3 = vpop.eup %2000  ;;  %2002 = vpow2.f32 %v959_v41  ;;  %v961_v30 = vmul.f32 1.442695, %v956_v14  ;;  %vm208_vm2 = vcmp.ge.f32.partialorder %v204_v35, 0.0 }
 0x20a   :  { %587 = vmatpush.msra.mxu1 %v1940_v27  ;;  %v537_v48 = vsel %vm221_vm3, %v2660_v3, 0.0 }
 0x20b   :  { %2004 = vpow2.f32 %v961_v30 }
 0x20c   :  { %588 = vmatpush.msra.mxu1 %v1941_v0  ;;  %v800_v0 = vadd.f32 %v2573_v19, %v794_v54 }
 0x20e   :  { %1948 = vrot.lane.b32.xlu1 %v2559_v51, %s2157_s20  ;;  %v808_v8 = vmul.f32 0.2, %v800_v0  ;;  %vm804_vm1 = vcmp.ge.f32.partialorder %v800_v0, 0.0 }
 0x20f   :  { %v2672_v19 = vpop.eup %2002 }
 0x211   :  { %v2683_v23 = vpop.eup %2004 }
 0x212   :  { %v970_v41 = vsel %vm221_vm3, %v2683_v23, 0.0 }
 0x215   :  { %v2649_v25 = vpop.xlane.xlu1 %1262 }
 0x21b   :  { %1953 = vrot.lane.b32.xlu0 %v1952_v56, %s2158_s21 }
 0x22d   :  { %v193_v60 = vpop.permute.xlu1 %192 }
 0x22e   :  { %v203_v11 = vadd.f32 %v2353_v53, %v193_v60  ;;  %v2669_v60 = vadd.f32 %v937_v47, %v2406_v45 }
 0x230   :  { %vm207_vm14 = vcmp.ge.f32.partialorder %v203_v11, 0.0  ;;  %v211_v9 = vmul.f32 0.2, %v203_v11  ;;  %v949_v54 = vsel %vm221_vm3, %v2669_v60, -inf }
 0x232   :  { %v215_v59 = vsel %vm207_vm14, %v203_v11, %v211_v9  ;;  %v812_v11 = vsel %vm804_vm1, %v800_v0, %v808_v8  ;;  %v967_v9 = vsel %vm221_vm3, %v2672_v19, 0.0  ;;  %v2694_v0 = vpack.i.bf16 %v2593_v18, %v2603_v55 }
 0x233   :  { %v2658_v27 = vadd.f32 %v215_v59, %v2406_v45  ;;  %v2679_v16 = vadd.f32 %v812_v11, %v2453_v57  ;;  %v2690_v59 = vpop.xlane.xlu0 %373  ;;  %v212_v18 = vmul.f32 0.2, %v204_v35  ;;  %v674_v55 = vsub.f32 %v2327_v37, %v2525_v7 }
 0x234   :  { %v1269_v11 = vsub.f32 %v2543_v12, %v2649_v25  ;;  %v1084_v37 = vadd.f32 %v2363_v63, %v2520_v33 }
 0x235   :  { %v228_v22 = vsel %vm221_vm3, %v2658_v27, -inf  ;;  %v826_v45 = vsel %vm221_vm3, %v2679_v16, -inf  ;;  %v2701_v47 = vpop.permute.xlu1 %1933  ;;  %v216_v8 = vsel %vm208_vm2, %v204_v35, %v212_v18 }
 0x236   :  { %229 = vmax.xlane.f32.xlu2 %v228_v22  ;;  %v2716_v30 = vadd.f32 %v216_v8, %v2453_v57  ;;  %v1092_v35 = vmul.f32 0.2, %v1084_v37  ;;  %vm1088_vm4 = vcmp.ge.f32.partialorder %v1084_v37, 0.0 }
 0x238   :  { %538 = vadd.xlane.f32.xlu1 %v537_v48  ;;  %v231_v53 = vsel %vm221_vm3, %v2716_v30, -inf }
 0x23b   :  { %v2699_v22 = vpop.xlane.xlu0 %690 }
 0x23e   :  { %950 = vmax.xlane.f32.xlu2 %v949_v54  ;;  %v678_v54 = vmul.f32 1.442695, %v674_v55 }
 0x240   :  { %968 = vadd.xlane.f32.xlu1 %v967_v9  ;;  %v1275_v9 = vmul.f32 1.442695, %v1269_v11 }
 0x245   :  { %827 = vmax.xlane.f32.xlu0 %v826_v45  ;;  %v235_v45 = vsub.f32 %v2471_v17, %v2588_v62  ;;  %v1096_v62 = vsel %vm1088_vm4, %v1084_v37, %v1092_v35 }
 0x247   :  { %v240_v63 = vmul.f32 1.442695, %v235_v45 }
 0x24d   :  { %971 = vadd.xlane.f32.xlu0 %v970_v41 }
 0x256   :  { %1922 = vrot.lane.b32.xlu2 %v2530_v40, %s2158_s21  ;;  %v2705_v40 = vpop.xlane.xlu0 %376 }
 0x259   :  { %1958 = vrot.lane.b32.xlu1 %v1952_v56, %s2156_s3 }
 0x260   :  { %v533_v48 = vpop.xlane.xlu1 %532 }
 0x261   :  { %1978 = vrot.lane.b32.xlu0 %v2694_v0, %s2157_s20  ;;  %1968 = vrot.lane.b32.xlu1 %v1952_v56, %s2157_s20  ;;  %v536_v56 = vpop.xlane.xlu0 %535  ;;  %2006 = vrcp.f32 %v533_v48 }
 0x262   :  { %2008 = vpow2.f32 %v678_v54 }
 0x263   :  { %2010 = vpow2.f32 %v1275_v9 }
 0x264   :  { %2012 = vrcp.f32 %v536_v56  ;;  %v2737_v56 = vadd.f32 %v1096_v62, %v2453_v57  ;;  %v518_v57 = vpop.xlane.xlu2 %517 }
 0x265   :  { %2014 = vpow2.f32 %v240_v63 }
 0x266   :  { %v1110_v11 = vsel %vm221_vm3, %v2737_v56, -inf }
 0x267   :  { %v2007_v52 = vpop.eup %2006 }
 0x268   :  { %v2711_v14 = vpop.xlane.xlu1 %953  ;;  %v2726_v48 = vpop.eup %2008  ;;  %v547_v18 = vmul.f32 %v2007_v52, %v2605_v31 }
 0x269   :  { %1973 = vrot.lane.b32.xlu1 %v2694_v0, %s2156_s3  ;;  %v2724_v41 = vpop.xlane.xlu0 %818  ;;  %v686_v17 = vsel %vm221_vm3, %v2726_v48, 0.0  ;;  %v2732_v33 = vpop.eup %2010 }
 0x26a   :  { %v2013_v55 = vpop.eup %2012  ;;  %v1285_v8 = vsel %vm221_vm3, %v2732_v33, 0.0 }
 0x26b   :  { %v548_v54 = vmul.f32 %v2013_v55, %v2579_v58  ;;  %v2745_v9 = vpop.eup %2014 }
 0x26c   :  { %v2753_v52 = vpop.xlane.xlu2 %1105 }
 0x271   :  { %v2739_v31 = vpop.xlane.xlu0 %379 }
 0x279   :  { %v2749_v37 = vpop.xlane.xlu0 %696 }
 0x27f   :  { %232 = vmax.xlane.f32.xlu2 %v231_v53  ;;  %v249_v53 = vsel %vm221_vm3, %v2745_v9, 0.0 }
 0x280   :  { %v1949_v7 = vpop.permute.xlu1 %1948 }
 0x281   :  { %v1951_v12 = vunpack.i.h.bf16 %v1949_v7  ;;  %v1950_v25 = vunpack.i.l.bf16 %v1949_v7  ;;  %v2751_v7 = vpop.xlane.xlu0 %821 }
 0x283   :  { %589 = vmatpush.msra.mxu1 %v1950_v25 }
 0x285   :  { %590 = vmatpush.msra.mxu1 %v1951_v12 }
 0x286   :  { %1798 = vmatmul.msk.f32.vlgmr.msra.gmra.mxu1 %vm221_vm3, %v547_v18 }
 0x287   :  { %687 = vadd.xlane.f32.xlu2 %v686_v17  ;;  %v1270_v17 = vsub.f32 %v2511_v28, %v2617_v24  ;;  %v676_v24 = vsub.f32 %v2437_v38, %v2568_v32  ;;  %v522_v38 = vsub.f32 %v2500_v49, %v518_v57  ;;  %v1267_v49 = vsub.f32 %v2339_v46, %v2532_v42 }
 0x288   :  { %v234_v46 = vsub.f32 %v2366_v5, %v2538_v1  ;;  %v1113_v1 = vsub.f32 %v2401_v44, %v2549_v26 }
 0x289   :  { %v2759_v45 = vpop.xlane.xlu0 %382 }
 0x28b   :  { %1286 = vadd.xlane.f32.xlu0 %v1285_v8 }
 0x28e   :  { %1799 = vmatmul.msk.f32.gmra.mxu1 %vm221_vm3, %v548_v54 }
 0x28f   :  { %1111 = vmax.xlane.f32.xlu2 %v1110_v11 }
 0x291   :  { %v825_v62 = vpop.xlane.xlu0 %824 }
 0x293   :  { %250 = vadd.xlane.f32.xlu1 %v249_v53  ;;  %v1935_v53 = vunpack.i.l.bf16 %v2701_v47 }
 0x2a7   :  { %1943 = vrot.lane.b32.xlu2 %v2559_v51, %s2156_s3  ;;  %v1277_v51 = vmul.f32 1.442695, %v1270_v17 }
 0x2a9   :  { %v2757_v58 = vpop.xlane.xlu2 %229 }
 0x2ab   :  { %v539_v12 = vpop.xlane.xlu1 %538 }
 0x2ac   :  { %2016 = vrcp.f32 %v539_v12 }
 0x2b1   :  { %v951_v25 = vpop.xlane.xlu2 %950 }
 0x2b2   :  { %v2017_v35 = vpop.eup %2016  ;;  %v957_v18 = vsub.f32 %v2669_v60, %v951_v25  ;;  %v958_v60 = vsub.f32 %v2620_v34, %v2711_v14  ;;  %v1936_v25 = vunpack.i.h.bf16 %v2701_v47  ;;  %v829_v34 = vsub.f32 %v2585_v13, %v2724_v41 }
 0x2b3   :  { %v549_v63 = vmul.f32 %v2017_v35, %v2660_v3  ;;  %v2771_v3 = vpop.permute.xlu0 %1953  ;;  %v2782_v14 = vpop.xlane.xlu1 %968  ;;  %v831_v13 = vsub.f32 %v2640_v4, %v825_v62  ;;  %v1271_v4 = vmul.f32 1.442695, %v1267_v49 }
 0x2b4   :  { %v963_v55 = vmul.f32 1.442695, %v957_v18  ;;  %v965_v35 = vmul.f32 1.442695, %v958_v60  ;;  %v833_v47 = vmul.f32 1.442695, %v829_v34 }
 0x2b5   :  { %1800 = vmatmul.msk.f32.gmra.mxu1 %vm221_vm3, %v549_v63  ;;  %v682_v63 = vmul.f32 1.442695, %v676_v24 }
 0x2b6   :  { %2018 = vpow2.f32 %v963_v55 }
 0x2b7   :  { %2020 = vpow2.f32 %v1277_v51  ;;  %v529_v51 = vmul.f32 1.442695, %v522_v38  ;;  %v238_v38 = vmul.f32 1.442695, %v234_v46  ;;  %v1955_v46 = vunpack.i.l.bf16 %v2771_v3 }
 0x2b8   :  { %2022 = vpow2.f32 %v965_v35 }
 0x2b9   :  { %v1923_v8 = vpop.permute.xlu2 %1922  ;;  %2024 = vpow2.f32 %v682_v63 }
 0x2ba   :  { %v1924_v54 = vunpack.i.l.bf16 %v1923_v8  ;;  %v1925_v12 = vunpack.i.h.bf16 %v1923_v8  ;;  %2026 = vpow2.f32 %v833_v47 }
 0x2bb   :  { %v2787_v32 = vpop.xlane.xlu0 %827  ;;  %2028 = vpow2.f32 %v529_v51 }
 0x2bc   :  { %v2766_v11 = vpop.eup %2018  ;;  %742 = vmatpush.msra.mxu2 %v1924_v54 }
 0x2bd   :  { %v973_v28 = vsel %vm221_vm3, %v2766_v11, 0.0  ;;  %v2778_v18 = vpop.eup %2020 }
 0x2be   :  { %743 = vmatpush.msra.mxu2 %v1925_v12  ;;  %974 = vadd.xlane.f32.xlu1 %v973_v28  ;;  %v1288_v17 = vsel %vm221_vm3, %v2778_v18, 0.0  ;;  %v2789_v55 = vpop.eup %2022 }
 0x2bf   :  { %v2791_v8 = vpop.eup %2024  ;;  %v976_v54 = vsel %vm221_vm3, %v2789_v55, 0.0 }
 0x2c0   :  { %744 = vmatpush.msra.mxu2 %v1935_v53  ;;  %v692_v57 = vsel %vm221_vm3, %v2791_v8, 0.0  ;;  %v837_v53 = vmul.f32 1.442695, %v831_v13  ;;  %v2804_v12 = vpop.eup %2026 }
 0x2c1   :  { %v2806_v62 = vpop.eup %2028  ;;  %v841_v28 = vsel %vm221_vm3, %v2804_v12, 0.0 }
 0x2c2   :  { %745 = vmatpush.msra.mxu2 %v1936_v25  ;;  %2030 = vpow2.f32 %v837_v53  ;;  %v540_v24 = vsel %vm221_vm3, %v2806_v62, 0.0 }
 0x2c3   :  { %v2802_v60 = vpop.xlane.xlu0 %971  ;;  %2032 = vpow2.f32 %v1271_v4 }
 0x2c4   :  { %2034 = vpow2.f32 %v238_v38 }
 0x2c6   :  { %1289 = vadd.xlane.f32.xlu1 %v1288_v17 }
 0x2c8   :  { %v2814_v17 = vpop.eup %2030 }
 0x2c9   :  { %v2816_v51 = vpop.eup %2032  ;;  %v847_v5 = vsel %vm221_vm3, %v2814_v17, 0.0 }
 0x2ca   :  { %v1279_v13 = vsel %vm221_vm3, %v2816_v51, 0.0  ;;  %v2824_v49 = vpop.eup %2034 }
 0x2cb   :  { %v2794_v41 = vpop.permute.xlu1 %1958 }
 0x2ce   :  { %977 = vadd.xlane.f32.xlu1 %v976_v54  ;;  %v1117_v54 = vmul.f32 1.442695, %v1113_v1 }
 0x2d0   :  { %693 = vadd.xlane.f32.xlu2 %v692_v57  ;;  %2036 = vpow2.f32 %v1117_v54  ;;  %v246_v57 = vsel %vm221_vm3, %v2824_v49, 0.0  ;;  %v1268_v54 = vsub.f32 %v2434_v36, %v2646_v61 }
 0x2d3   :  { %v1969_v42 = vpop.permute.xlu1 %1968  ;;  %v1979_v63 = vpop.permute.xlu0 %1978 }
 0x2d4   :  { %v1971_v25 = vunpack.i.h.bf16 %v1969_v42  ;;  %v1970_v35 = vunpack.i.l.bf16 %v1969_v42  ;;  %v1980_v34 = vunpack.i.l.bf16 %v1979_v63  ;;  %v1981_v47 = vunpack.i.h.bf16 %v1979_v63 }
 0x2d6   :  { %842 = vadd.xlane.f32.xlu1 %v841_v28  ;;  %1181 = vmatpush.msra.mxu1 %v1970_v35  ;;  %v2828_v53 = vpop.eup %2036 }
 0x2d7   :  { %v1125_v4 = vsel %vm221_vm3, %v2828_v53, 0.0 }
 0x2d8   :  { %541 = vadd.xlane.f32.xlu2 %v540_v24  ;;  %1182 = vmatpush.msra.mxu1 %v1971_v25  ;;  %v1956_v25 = vunpack.i.h.bf16 %v2771_v3  ;;  %v1960_v3 = vunpack.i.l.bf16 %v2794_v41 }
 0x2da   :  { %1183 = vmatpush.msra.mxu1 %v1980_v34 }
 0x2db   :  { %v1974_v1 = vpop.permute.xlu1 %1973 }
 0x2dc   :  { %1184 = vmatpush.msra.mxu1 %v1981_v47 }
 0x2de   :  { %848 = vadd.xlane.f32.xlu1 %v847_v5  ;;  %v1961_v5 = vunpack.i.h.bf16 %v2794_v41 }
 0x2e0   :  { %1280 = vadd.xlane.f32.xlu2 %v1279_v13  ;;  %v1976_v13 = vunpack.i.h.bf16 %v1974_v1 }
 0x2e8   :  { %247 = vadd.xlane.f32.xlu2 %v246_v57 }
 0x2f0   :  { %1126 = vadd.xlane.f32.xlu2 %v1125_v4  ;;  %v1273_v4 = vmul.f32 1.442695, %v1268_v54 }
 0x2f2   :  { %v2832_v44 = vpop.xlane.xlu2 %232 }
 0x2fa   :  { %v688_v26 = vpop.xlane.xlu2 %687 }
 0x2fb   :  { %2038 = vrcp.f32 %v688_v26 }
 0x2fc   :  { %2040 = vrcp.f32 %v2699_v22 }
 0x2fd   :  { %2042 = vrcp.f32 %v2690_v59 }
 0x2fe   :  { %2044 = vrcp.f32 %v2705_v40 }
 0x2ff   :  { %2046 = vrcp.f32 %v2739_v31 }
 0x300   :  { %2048 = vrcp.f32 %v2759_v45 }
 0x301   :  { %v2039_v28 = vpop.eup %2038  ;;  %2050 = vrcp.f32 %v2782_v14 }
 0x302   :  { %v702_v42 = vmul.f32 %v2039_v28, %v2726_v48  ;;  %v2837_v24 = vpop.xlane.xlu2 %1111  ;;  %v2041_v63 = vpop.eup %2040  ;;  %2052 = vpow2.f32 %v1273_v4 }
 0x303   :  { %v592_v35 = vpop.f32.mrf.mxu1  ;;  %v703_v48 = vmul.f32 %v2041_v63, %v2561_v29  ;;  %v2043_v34 = vpop.eup %2042  ;;  %2054 = vrcp.f32 %v2802_v60 }
 0x304   :  { %608 = vrot.lane.b32.xlu1 %v592_v35, %s2157_s20  ;;  %1802 = vmatmul.msk.f32.vlgmr.msra.gmra.mxu2 %vm221_vm3, %v702_v42  ;;  %v388_v59 = vmul.f32 %v2043_v34, %v2553_v43  ;;  %v2045_v29 = vpop.eup %2044 }
 0x305   :  { %1335 = vmatpush.msra.mxu2 %v1955_v46  ;;  %v389_v40 = vmul.f32 %v2045_v29, %v2570_v2  ;;  %v2047_v43 = vpop.eup %2046  ;;  %v1114_v2 = vsub.f32 %v2506_v10, %v2753_v52 }
 0x306   :  { %v390_v41 = vmul.f32 %v2047_v43, %v2595_v20  ;;  %v2049_v57 = vpop.eup %2048  ;;  %v2865_v45 = vpop.xlane.xlu1 %250 }
 0x307   :  { %1336 = vmatpush.msra.mxu2 %v1956_v25  ;;  %v391_v31 = vmul.f32 %v2049_v57, %v2633_v6  ;;  %v2051_v20 = vpop.eup %2050  ;;  %v1119_v26 = vmul.f32 1.442695, %v1114_v2  ;;  %v236_v6 = vsub.f32 %v2658_v27, %v2757_v58 }
 0x308   :  { %1963 = vrot.lane.b32.xlu2 %v2694_v0, %s2158_s21  ;;  %v1975_v0 = vunpack.i.l.bf16 %v1974_v1  ;;  %v2867_v28 = vpop.eup %2052  ;;  %v983_v36 = vmul.f32 %v2051_v20, %v2672_v19  ;;  %v1115_v19 = vsub.f32 %v2482_v39, %v2601_v50 }
 0x309   :  { %2056 = vpow2.f32 %v1119_v26  ;;  %v1282_v10 = vsel %vm221_vm3, %v2867_v28, 0.0  ;;  %v2055_v52 = vpop.eup %2054  ;;  %v242_v14 = vmul.f32 1.442695, %v236_v6 }
 0x30a   :  { %v1944_v22 = vpop.permute.xlu2 %1943  ;;  %v984_v60 = vmul.f32 %v2055_v52, %v2683_v23  ;;  %v1121_v25 = vmul.f32 1.442695, %v1115_v19  ;;  %v237_v23 = vsub.f32 %v2716_v30, %v2832_v44 }
 0x30b   :  { %v1945_v38 = vunpack.i.l.bf16 %v1944_v22  ;;  %v1946_v47 = vunpack.i.h.bf16 %v1944_v22 }
 0x30c   :  { %1803 = vmatmul.msk.f32.gmra.mxu2 %vm221_vm3, %v703_v48  ;;  %v244_v22 = vmul.f32 1.442695, %v237_v23 }
 0x30d   :  { %434 = vmatpush.msrb.mxu0 %v1945_v38 }
 0x30f   :  { %435 = vmatpush.msrb.mxu0 %v1946_v47  ;;  %v2876_v46 = vpop.eup %2056 }
 0x310   :  { %1794 = vmatmul.msk.f32.vlgmr.msrb.gmra.mxu0 %vm221_vm3, %v388_v59  ;;  %v1128_v27 = vsel %vm221_vm3, %v2876_v46, 0.0 }
 0x311   :  { %1027 = vmatpush.msra.mxu0 %v1960_v3 }
 0x313   :  { %1028 = vmatpush.msra.mxu0 %v1961_v5 }
 0x315   :  { %1029 = vmatpush.msra.mxu0 %v1975_v0 }
 0x317   :  { %1030 = vmatpush.msra.mxu0 %v1976_v13 }
 0x318   :  { %1795 = vmatmul.msk.f32.gmra.mxu0 %vm221_vm3, %v389_v40 }
 0x320   :  { %1796 = vmatmul.msk.f32.gmra.mxu0 %vm221_vm3, %v390_v41 }
 0x328   :  { %1797 = vmatmul.msk.f32.gmra.mxu0 %vm221_vm3, %v391_v31 }
 0x330   :  { %1810 = vmatmul.msk.f32.vlgmr.msra.gmra.mxu0 %vm221_vm3, %v983_v36 }
 0x331   :  { %1283 = vadd.xlane.f32.xlu2 %v1282_v10  ;;  %v975_v61 = vpop.xlane.xlu1 %974 }
 0x332   :  { %2058 = vrcp.f32 %v975_v61 }
 0x333   :  { %2060 = vpow2.f32 %v242_v14 }
 0x334   :  { %2062 = vpow2.f32 %v1121_v25 }
 0x338   :  { %1811 = vmatmul.msk.f32.gmra.mxu0 %vm221_vm3, %v984_v60  ;;  %v2059_v42 = vpop.eup %2058 }
 0x339   :  { %1129 = vadd.xlane.f32.xlu2 %v1128_v27  ;;  %v2884_v58 = vpop.xlane.xlu1 %1289  ;;  %v2886_v35 = vpop.eup %2060  ;;  %v985_v63 = vmul.f32 %v2059_v42, %v2766_v11  ;;  %v1116_v11 = vsub.f32 %v2737_v56, %v2837_v24  ;;  %v830_v56 = vsub.f32 %v2623_v15, %v2751_v7  ;;  %v832_v15 = vsub.f32 %v2679_v16, %v2787_v32 }
 0x33a   :  { %v252_v39 = vsel %vm221_vm3, %v2886_v35, 0.0  ;;  %v2894_v34 = vpop.eup %2062  ;;  %v1287_v27 = vpop.xlane.xlu0 %1286 }
 0x33b   :  { %v1131_v30 = vsel %vm221_vm3, %v2894_v34, 0.0  ;;  %v1123_v47 = vmul.f32 1.442695, %v1116_v11  ;;  %v835_v0 = vmul.f32 1.442695, %v830_v56 }
 0x33c   :  { %v839_v43 = vmul.f32 1.442695, %v832_v15  ;;  %v1447_v15 = vld [vmem:[%s3182_s7 + $0x68] sm:$0xff] }
 0x340   :  { %1812 = vmatmul.msk.f32.gmra.mxu0 %vm221_vm3, %v985_v63 }
 0x341   :  { %253 = vadd.xlane.f32.xlu2 %v252_v39  ;;  %v978_v50 = vpop.xlane.xlu1 %977 }
 0x342   :  { %2064 = vrcp.f32 %v978_v50 }
 0x343   :  { %v694_v48 = vpop.xlane.xlu2 %693 }
 0x344   :  { %2066 = vrcp.f32 %v694_v48 }
 0x345   :  { %2068 = vpow2.f32 %v244_v22 }
 0x346   :  { %2070 = vrcp.f32 %v2749_v37 }
 0x348   :  { %v2065_v38 = vpop.eup %2064 }
 0x349   :  { %1132 = vadd.xlane.f32.xlu2 %v1131_v30  ;;  %v986_v44 = vmul.f32 %v2065_v38, %v2789_v55 }
 0x34a   :  { %v2067_v3 = vpop.eup %2066 }
 0x34b   :  { %v542_v59 = vpop.xlane.xlu2 %541  ;;  %1813 = vmatmul.msk.f32.gmra.mxu0 %vm221_vm3, %v986_v44  ;;  %v704_v5 = vmul.f32 %v2067_v3, %v2791_v8  ;;  %v2904_v1 = vpop.eup %2068 }
 0x34c   :  { %2072 = vrcp.f32 %v542_v59  ;;  %v2071_v24 = vpop.eup %2070  ;;  %v255_v55 = vsel %vm221_vm3, %v2904_v1, 0.0  ;;  %v843_v3 = vpop.xlane.xlu1 %842 }
 0x34d   :  { %1804 = vmatmul.msk.f32.gmra.mxu2 %vm221_vm3, %v704_v5  ;;  %2074 = vpow2.f32 %v1123_v47  ;;  %v705_v8 = vmul.f32 %v2071_v24, %v2609_v21 }
 0x34e   :  { %2076 = vpow2.f32 %v835_v0 }
 0x351   :  { %256 = vadd.xlane.f32.xlu2 %v255_v55 }
 0x352   :  { %v2073_v37 = vpop.eup %2072 }
 0x353   :  { %v1281_v29 = vpop.xlane.xlu2 %1280  ;;  %v550_v13 = vmul.f32 %v2073_v37, %v2806_v62  ;;  %v2913_v40 = vpop.eup %2074 }
 0x354   :  { %v1134_v7 = vsel %vm221_vm3, %v2913_v40, 0.0  ;;  %v2921_v62 = vpop.eup %2076 }
 0x355   :  { %1801 = vmatmul.msk.f32.gmra.mxu1 %vm221_vm3, %v550_v13  ;;  %1805 = vmatmul.msk.f32.gmra.mxu2 %vm221_vm3, %v705_v8  ;;  %v844_v21 = vsel %vm221_vm3, %v2921_v62, 0.0  ;;  %v849_v13 = vpop.xlane.xlu1 %848 }
 0x359   :  { %1135 = vadd.xlane.f32.xlu2 %v1134_v7 }
 0x35b   :  { %v248_v41 = vpop.xlane.xlu2 %247 }
 0x35c   :  { %2078 = vrcp.f32 %v248_v41  ;;  %v1446_v41 = vld [vmem:[%s3182_s7 + $0x60] sm:$0xff] }
 0x35d   :  { %2080 = vpow2.f32 %v839_v43 }
 0x35e   :  { %2082 = vrcp.f32 %v2865_v45 }
 0x361   :  { %845 = vadd.xlane.f32.xlu2 %v844_v21 }
 0x362   :  { %v2079_v54 = vpop.eup %2078 }
 0x363   :  { %v1127_v57 = vpop.xlane.xlu2 %1126  ;;  %v262_v16 = vmul.f32 %v2079_v54, %v2824_v49  ;;  %v2927_v32 = vpop.eup %2080  ;;  %v1444_v54 = vld [vmem:[%s3182_s7 + $0x50] sm:$0xff] }
 0x364   :  { %2084 = vrcp.f32 %v1127_v57  ;;  %v2083_v4 = vpop.eup %2082  ;;  %v850_v31 = vsel %vm221_vm3, %v2927_v32, 0.0 }
 0x365   :  { %1790 = vmatmul.msk.f32.vlgmr.msrb.gmra.mxu3 %vm221_vm3, %v262_v16  ;;  %2086 = vrcp.f32 %v1281_v29  ;;  %v263_v45 = vmul.f32 %v2083_v4, %v2745_v9  ;;  %v595_v9 = vpop.f32.mrf.mxu1  ;;  %v1448_v29 = vld [vmem:[%s3182_s7 + $0x70] sm:$0xff]  ;;  %v1443_v16 = vld [vmem:[%s3182_s7 + $0x48] sm:$0xff] }
 0x369   :  { %851 = vadd.xlane.f32.xlu2 %v850_v31  ;;  %v1442_v31 = vld [vmem:[%s3182_s7 + $0x40] sm:$0xff] }
 0x36a   :  { %v2085_v2 = vpop.eup %2084 }
 0x36b   :  { %v1141_v20 = vmul.f32 %v2085_v2, %v2828_v53  ;;  %v1964_v26 = vpop.permute.xlu2 %1963  ;;  %v2087_v36 = vpop.eup %2086 }
 0x36c   :  { %v1965_v6 = vunpack.i.l.bf16 %v1964_v26  ;;  %v1966_v49 = vunpack.i.h.bf16 %v1964_v26  ;;  %v1295_v10 = vmul.f32 %v2087_v36, %v2816_v51  ;;  %v1440_v26 = vld [vmem:[%s3182_s7 + $0x30] sm:$0xff]  ;;  %v1439_v36 = vld [vmem:[%s3182_s7 + $0x28] sm:$0xff] }
 0x36d   :  { %1791 = vmatmul.msk.f32.gmra.mxu3 %vm221_vm3, %v263_v45  ;;  %1814 = vmatmul.msk.f32.vlgmr.msra.gmra.mxu1 %vm221_vm3, %v1141_v20  ;;  %v598_v14 = vpop.f32.mrf.mxu1  ;;  %v1441_v20 = vld [vmem:[%s3182_s7 + $0x38] sm:$0xff] }
 0x36e   :  { %1337 = vmatpush.msra.mxu2 %v1965_v6 }
 0x370   :  { %1338 = vmatpush.msra.mxu2 %v1966_v49  ;;  %v1438_v49 = vld [vmem:[%s3182_s7 + $0x20] sm:$0xff] }
 0x371   :  { %1818 = vmatmul.msk.f32.vlgmr.msra.gmra.mxu2 %vm221_vm3, %v1295_v10  ;;  %v1436_v10 = vld [vmem:[%s3182_s7 + $0x10] sm:$0xff] }
 0x387   :  { %v747_v61 = vpop.f32.mrf.mxu2 }
 0x388   :  { %763 = vrot.lane.b32.xlu2 %v747_v61, %s2156_s3 }
 0x38d   :  { %v437_v53 = vpop.f32.mrf.mxu0 }
 0x38e   :  { %453 = vrot.lane.b32.xlu0 %v437_v53, %s2158_s21  ;;  %v1435_v53 = vld [vmem:[%s3182_s7 + $0x8] sm:$0xff] }
 0x38f   :  { %v750_v60 = vpop.f32.mrf.mxu2 }
 0x395   :  { %v440_v52 = vpop.f32.mrf.mxu0 }
 0x396   :  { %455 = vrot.lane.b32.xlu1 %v440_v52, %s2158_s21  ;;  %610 = vrot.lane.b32.xlu0 %v595_v9, %s2157_s20  ;;  %v1434_v9 = vld [vmem:[%s3182_s7] sm:$0xff] }
 0x39d   :  { %v443_v19 = vpop.f32.mrf.mxu0 }
 0x39e   :  { %612 = vrot.lane.b32.xlu0 %v598_v14, %s2157_s20  ;;  %765 = vrot.lane.b32.xlu1 %v750_v60, %s2156_s3  ;;  %v609_v14 = vpop.permute.xlu1 %608 }
 0x3a4   :  { %v1284_v51 = vpop.xlane.xlu2 %1283 }
 0x3a5   :  { %2088 = vrcp.f32 %v1284_v51 }
 0x3a6   :  { %457 = vrot.lane.b32.xlu1 %v443_v19, %s2158_s21  ;;  %2090 = vrcp.f32 %v1287_v27  ;;  %v3034_v19 = vld [vmem:[%s3183_s6] sm:$0x3] }
 0x3a7   :  { %v3037_v27 = vperm.slane %v3034_v19, 0 }
 0x3ab   :  { %v2089_v42 = vpop.eup %2088 }
 0x3ac   :  { %v1130_v25 = vpop.xlane.xlu2 %1129  ;;  %v1296_v63 = vmul.f32 %v2089_v42, %v2867_v28  ;;  %v2091_v23 = vpop.eup %2090 }
 0x3ad   :  { %2092 = vrcp.f32 %v1130_v25  ;;  %v1297_v48 = vmul.f32 %v2091_v23, %v2732_v33 }
 0x3ae   :  { %1819 = vmatmul.msk.f32.gmra.mxu2 %vm221_vm3, %v1296_v63  ;;  %2094 = vrcp.f32 %v2884_v58 }
 0x3b3   :  { %v2093_v39 = vpop.eup %2092 }
 0x3b4   :  { %v254_v50 = vpop.xlane.xlu2 %253  ;;  %v1142_v22 = vmul.f32 %v2093_v39, %v2876_v46  ;;  %v2095_v11 = vpop.eup %2094 }
 0x3b5   :  { %2096 = vrcp.f32 %v254_v50  ;;  %v1298_v44 = vmul.f32 %v2095_v11, %v2778_v18  ;;  %v446_v18 = vpop.f32.mrf.mxu0 }
 0x3b6   :  { %1815 = vmatmul.msk.f32.gmra.mxu1 %vm221_vm3, %v1142_v22  ;;  %1820 = vmatmul.msk.f32.gmra.mxu2 %vm221_vm3, %v1297_v48 }
 0x3bb   :  { %v2097_v38 = vpop.eup %2096 }
 0x3bc   :  { %v1133_v28 = vpop.xlane.xlu2 %1132  ;;  %v264_v30 = vmul.f32 %v2097_v38, %v2886_v35 }
 0x3bd   :  { %2098 = vrcp.f32 %v1133_v28 }
 0x3be   :  { %1792 = vmatmul.msk.f32.gmra.mxu3 %vm221_vm3, %v264_v30  ;;  %1821 = vmatmul.msk.f32.gmra.mxu2 %vm221_vm3, %v1298_v44 }
 0x3c3   :  { %v2099_v46 = vpop.eup %2098 }
 0x3c4   :  { %v257_v58 = vpop.xlane.xlu2 %256  ;;  %v1143_v33 = vmul.f32 %v2099_v46, %v2894_v34 }
 0x3c5   :  { %2100 = vrcp.f32 %v257_v58 }
 0x3c6   :  { %1816 = vmatmul.msk.f32.gmra.mxu1 %vm221_vm3, %v1143_v33  ;;  %2102 = vrcp.f32 %v843_v3 }
 0x3cb   :  { %v2101_v47 = vpop.eup %2100 }
 0x3cc   :  { %v1136_v59 = vpop.xlane.xlu2 %1135  ;;  %v265_v35 = vmul.f32 %v2101_v47, %v2904_v1  ;;  %v2103_v56 = vpop.eup %2102  ;;  %v1449_v1 = vld [vmem:[%s3182_s7 + $0x78] sm:$0xff] }
 0x3cd   :  { %2104 = vrcp.f32 %v1136_v59  ;;  %v857_v34 = vmul.f32 %v2103_v56, %v2804_v12  ;;  %1466 = vmatpush.msrb.mxu3 %v1449_v1  ;;  %1840 = vmatpush.lsf.msrb.mxu1 %v1449_v1  ;;  %v1032_v12 = vpop.f32.mrf.mxu0  ;;  %v1465_v47 = vld [vmem:[%s3182_s7 + $0xf8] sm:$0xff]  ;;  %v1464_v59 = vld [vmem:[%s3182_s7 + $0xf0] sm:$0xff] }
 0x3ce   :  { %1793 = vmatmul.msk.f32.gmra.mxu3 %vm221_vm3, %v265_v35  ;;  %1495 = vmatpush.msrb.mxu0 %v1465_v47 }
 0x3cf   :  { %1467 = vmatpush.msrb.mxu3 %v1448_v29  ;;  %1841 = vmatpush.lsf.msrb.mxu1 %v1448_v29  ;;  %v1459_v29 = vld [vmem:[%s3182_s7 + $0xc8] sm:$0xff] }
 0x3d0   :  { %v753_v5 = vpop.f32.mrf.mxu2  ;;  %1861 = vmatpush.lsf.msrb.mxu2 %v1465_v47  ;;  %1496 = vmatpush.msrb.mxu0 %v1464_v59 }
 0x3d1   :  { %767 = vrot.lane.b32.xlu1 %v753_v5, %s2156_s3  ;;  %1842 = vmatpush.lsf.msrb.mxu1 %v1447_v15  ;;  %v1463_v5 = vld [vmem:[%s3182_s7 + $0xe8] sm:$0xff] }
 0x3d2   :  { %v601_v24 = vpop.f32.mrf.mxu1  ;;  %1468 = vmatpush.msrb.mxu3 %v1447_v15  ;;  %1862 = vmatpush.lsf.msrb.mxu2 %v1464_v59  ;;  %v1456_v15 = vld [vmem:[%s3182_s7 + $0xb0] sm:$0xff] }
 0x3d3   :  { %v2105_v55 = vpop.eup %2104  ;;  %614 = vrot.lane.b32.xlu0 %v601_v24, %s2157_s20  ;;  %1843 = vmatpush.lsf.msrb.mxu1 %v1446_v41  ;;  %v1462_v24 = vld [vmem:[%s3182_s7 + $0xe0] sm:$0xff] }
 0x3d4   :  { %v846_v37 = vpop.xlane.xlu2 %845  ;;  %v1144_v0 = vmul.f32 %v2105_v55, %v2913_v40  ;;  %1469 = vmatpush.msrb.mxu3 %v1446_v41  ;;  %1497 = vmatpush.msrb.mxu0 %v1463_v5  ;;  %v1461_v55 = vld [vmem:[%s3182_s7 + $0xd8] sm:$0xff] }
 0x3d5   :  { %2106 = vrcp.f32 %v846_v37  ;;  %v1035_v52 = vpop.f32.mrf.mxu0  ;;  %1863 = vmatpush.lsf.msrb.mxu2 %v1463_v5 }
 0x3d6   :  { %1806 = vmatmul.msk.f32.vlgmr.msra.gmra.mxu3 %vm221_vm3, %v857_v34  ;;  %1817 = vmatmul.msk.f32.gmra.mxu1 %vm221_vm3, %v1144_v0  ;;  %2108 = vrcp.f32 %v849_v13  ;;  %v1460_v34 = vld [vmem:[%s3182_s7 + $0xd0] sm:$0xff] }
 0x3d7   :  { %1498 = vmatpush.msrb.mxu0 %v1462_v24  ;;  %1864 = vmatpush.lsf.msrb.mxu2 %v1462_v24 }
 0x3d8   :  { %v756_v7 = vpop.f32.mrf.mxu2 }
 0x3d9   :  { %459 = vrot.lane.b32.xlu1 %v446_v18, %s2158_s21  ;;  %1499 = vmatpush.msrb.mxu0 %v1461_v55 }
 0x3da   :  { %1865 = vmatpush.lsf.msrb.mxu2 %v1461_v55 }
 0x3db   :  { %v2107_v8 = vpop.eup %2106  ;;  %1048 = vrot.lane.b32.xlu0 %v1032_v12, %s2158_s21  ;;  %1500 = vmatpush.msrb.mxu0 %v1460_v34 }
 0x3dc   :  { %v858_v40 = vmul.f32 %v2107_v8, %v2921_v62  ;;  %v852_v43 = vpop.xlane.xlu2 %851  ;;  %v2109_v21 = vpop.eup %2108  ;;  %v1445_v62 = vld [vmem:[%s3182_s7 + $0x58] sm:$0xff]  ;;  %1866 = vmatpush.lsf.msrb.mxu2 %v1460_v34  ;;  %v1458_v8 = vld [vmem:[%s3182_s7 + $0xc0] sm:$0xff] }
 0x3dd   :  { %2110 = vrcp.f32 %v852_v43  ;;  %1470 = vmatpush.msrb.mxu3 %v1445_v62  ;;  %v859_v57 = vmul.f32 %v2109_v21, %v2814_v17  ;;  %1844 = vmatpush.lsf.msrb.mxu1 %v1445_v62  ;;  %v1038_v35 = vpop.f32.mrf.mxu0  ;;  %v1455_v43 = vld [vmem:[%s3182_s7 + $0xa8] sm:$0xff]  ;;  %v1454_v62 = vld [vmem:[%s3182_s7 + $0xa0] sm:$0xff] }
 0x3de   :  { %1807 = vmatmul.msk.f32.gmra.mxu3 %vm221_vm3, %v858_v40  ;;  %1501 = vmatpush.msrb.mxu0 %v1459_v29  ;;  %v1457_v40 = vld [vmem:[%s3182_s7 + $0xb8] sm:$0xff] }
 0x3df   :  { %1471 = vmatpush.msrb.mxu3 %v1444_v54  ;;  %1845 = vmatpush.lsf.msrb.mxu1 %v1444_v54 }
 0x3e0   :  { %1867 = vmatpush.lsf.msrb.mxu2 %v1459_v29  ;;  %1502 = vmatpush.msrb.mxu0 %v1458_v8  ;;  %v18_v29 = vstv %s3184_s9 }
 0x3e1   :  { %769 = vrot.lane.b32.xlu1 %v756_v7, %s2156_s3  ;;  %1472 = vmatpush.msrb.mxu3 %v1443_v16  ;;  %19 = vst [vmem:[#allocation4] sm:$0x1] %v18_v29 }
 0x3e2   :  { %1846 = vmatpush.lsf.msrb.mxu1 %v1443_v16  ;;  %1868 = vmatpush.lsf.msrb.mxu2 %v1458_v8 }
 0x3e3   :  { %v2111_v2 = vpop.eup %2110  ;;  %1473 = vmatpush.msrb.mxu3 %v1442_v31  ;;  %1503 = vmatpush.msrb.mxu0 %v1457_v40 }
 0x3e4   :  { %1847 = vmatpush.lsf.msrb.mxu1 %v1442_v31  ;;  %v860_v45 = vmul.f32 %v2111_v2, %v2927_v32  ;;  %v1437_v32 = vld [vmem:[%s3182_s7 + $0x18] sm:$0xff]  ;;  %v764_v51 = vpop.permute.xlu2 %763  ;;  %1869 = vmatpush.lsf.msrb.mxu2 %v1457_v40  ;;  %v1452_v31 = vld [vmem:[%s3182_s7 + $0x90] sm:$0xff] }
 0x3e5   :  { %1474 = vmatpush.msrb.mxu3 %v1441_v20  ;;  %v1041_v7 = vpop.f32.mrf.mxu0  ;;  %1504 = vmatpush.msrb.mxu0 %v1456_v15 }
 0x3e6   :  { %1808 = vmatmul.msk.f32.gmra.mxu3 %vm221_vm3, %v859_v57  ;;  %1848 = vmatpush.lsf.msrb.mxu1 %v1441_v20  ;;  %v1453_v57 = vld [vmem:[%s3182_s7 + $0x98] sm:$0xff] }
 0x3e7   :  { %1475 = vmatpush.msrb.mxu3 %v1440_v26  ;;  %1870 = vmatpush.lsf.msrb.mxu2 %v1456_v15  ;;  %v16_v15 = vstv %s3185_s8 }
 0x3e8   :  { %v295_v4 = vpop.f32.mrf.mxu3  ;;  %1849 = vmatpush.lsf.msrb.mxu1 %v1440_v26  ;;  %1505 = vmatpush.msrb.mxu0 %v1455_v43  ;;  %17 = vst [vmem:[#allocation3] sm:$0x1] %v16_v15 }
 0x3e9   :  { %307 = vst.msk [vmem:[#allocation2] sm:$0xff] %vm221_vm3, %v295_v4  ;;  %1476 = vmatpush.msrb.mxu3 %v1439_v36  ;;  %1871 = vmatpush.lsf.msrb.mxu2 %v1455_v43 }
 0x3ea   :  { %v1186_v17 = vpop.f32.mrf.mxu1  ;;  %1850 = vmatpush.lsf.msrb.mxu1 %v1439_v36  ;;  %1506 = vmatpush.msrb.mxu0 %v1454_v62 }
 0x3eb   :  { %1202 = vrot.lane.b32.xlu0 %v1186_v17, %s2157_s20  ;;  %1477 = vmatpush.msrb.mxu3 %v1438_v49  ;;  %v1451_v17 = vld [vmem:[%s3182_s7 + $0x88] sm:$0xff] }
 0x3ec   :  { %1851 = vmatpush.lsf.msrb.mxu1 %v1438_v49  ;;  %1872 = vmatpush.lsf.msrb.mxu2 %v1454_v62 }
 0x3ed   :  { %1478 = vmatpush.msrb.mxu3 %v1437_v32  ;;  %1507 = vmatpush.msrb.mxu0 %v1453_v57 }
 0x3ee   :  { %1809 = vmatmul.msk.f32.gmra.mxu3 %vm221_vm3, %v860_v45  ;;  %1852 = vmatpush.lsf.msrb.mxu1 %v1437_v32  ;;  %v1450_v45 = vld [vmem:[%s3182_s7 + $0x80] sm:$0xff] }
 0x3ef   :  { %1479 = vmatpush.msrb.mxu3 %v1436_v10  ;;  %1873 = vmatpush.lsf.msrb.mxu2 %v1453_v57 }
 0x3f0   :  { %v298_v6 = vpop.f32.mrf.mxu3  ;;  %1853 = vmatpush.lsf.msrb.mxu1 %v1436_v10  ;;  %1508 = vmatpush.msrb.mxu0 %v1452_v31 }
 0x3f1   :  { %308 = vst.msk [vmem:[#allocation2 + $0x10] sm:$0xff] %vm221_vm3, %v298_v6  ;;  %1480 = vmatpush.msrb.mxu3 %v1435_v53  ;;  %1874 = vmatpush.lsf.msrb.mxu2 %v1452_v31 }
 0x3f2   :  { %1854 = vmatpush.lsf.msrb.mxu1 %v1435_v53  ;;  %1509 = vmatpush.msrb.mxu0 %v1451_v17 }
 0x3f3   :  { %1481 = vmatpush.msrb.mxu3 %v1434_v9  ;;  %1875 = vmatpush.lsf.msrb.mxu2 %v1451_v17 }
 0x3f4   :  { %v1340_v61 = vpop.f32.mrf.mxu2  ;;  %1855 = vmatpush.lsf.msrb.mxu1 %v1434_v9  ;;  %1510 = vmatpush.msrb.mxu0 %v1450_v45 }
 0x3f5   :  { %1356 = vrot.lane.b32.xlu2 %v1340_v61, %s2156_s3  ;;  %1856 = vllmr.1.mxu1 }
 0x3f6   :  { %1876 = vmatpush.lsf.msrb.mxu2 %v1450_v45 }
 0x3f7   :  { %1877 = vllmr.1.mxu2 }
 0x3fd   :  { %1050 = vrot.lane.b32.xlu2 %v1035_v52, %s2158_s21 }
 0x400   :  { %v454_v60 = vpop.permute.xlu0 %453 }
 0x401   :  { %466 = vst.msk [vmem:[#allocation2] sm:$0xff] %vm465_vm5, %v454_v60 }
 0x402   :  { %621 = vst.msk [vmem:[#allocation2] sm:$0xff] %vm620_vm6, %v609_v14 }
 0x403   :  { %776 = vst.msk [vmem:[#allocation2] sm:$0xff] %vm775_vm7, %v764_v51 }
 0x408   :  { %v456_v42 = vpop.permute.xlu1 %455  ;;  %v611_v25 = vpop.permute.xlu0 %610 }
 0x409   :  { %467 = vst.msk [vmem:[#allocation2 + $0x10] sm:$0xff] %vm465_vm5, %v456_v42  ;;  %v1383_v42 = vperm.slane %v3034_v19, 1 }
 0x40a   :  { %622 = vst.msk [vmem:[#allocation2 + $0x10] sm:$0xff] %vm620_vm6, %v611_v25  ;;  %v1372_v63 = vld [vmem:[#allocation2] sm:$0xff] }
 0x40b   :  { %v1386_v23 = vadd.f32 %v3037_v27, %v1372_v63 }
 0x40d   :  { %v1402_v39 = vmul.f32 1.442695, %v1386_v23  ;;  %vm1394_vm8 = vcmp.gt.f32.partialorder %v1386_v23, 0.0 }
 0x40f   :  { %2112 = vpow2.f32 %v1402_v39 }
 0x410   :  { %v766_v50 = vpop.permute.xlu1 %765  ;;  %v613_v1 = vpop.permute.xlu0 %612 }
 0x411   :  { %777 = vst.msk [vmem:[#allocation2 + $0x10] sm:$0xff] %vm775_vm7, %v766_v50 }
 0x415   :  { %v2113_v22 = vpop.eup %2112 }
 0x416   :  { %v1822_v48 = vadd.f32 -1.0, %v2113_v22 }
 0x418   :  { %v3043_v11 = vsel %vm1394_vm8, %v1386_v23, %v1822_v48  ;;  %v1374_v38 = vld [vmem:[#allocation2 + $0x10] sm:$0xff]  ;;  %v458_v56 = vpop.permute.xlu1 %457 }
 0x419   :  { %1482 = vmatmul.f32.vlgmr.msrb.gmra.mxu3 %v3043_v11  ;;  %v1388_v28 = vadd.f32 %v3037_v27, %v1374_v38 }
 0x41b   :  { %v1406_v30 = vmul.f32 1.442695, %v1388_v28  ;;  %vm1396_vm9 = vcmp.gt.f32.partialorder %v1388_v28, 0.0 }
 0x41d   :  { %2114 = vpow2.f32 %v1406_v30 }
 0x423   :  { %v2115_v44 = vpop.eup %2114 }
 0x424   :  { %v1824_v46 = vadd.f32 -1.0, %v2115_v44 }
 0x426   :  { %v3047_v58 = vsel %vm1396_vm9, %v1388_v28, %v1824_v46 }
 0x427   :  { %1485 = vmatmul.f32.gmra.mxu3 %v3047_v58 }
 0x431   :  { %v1343_v33 = vpop.f32.mrf.mxu2 }
 0x432   :  { %1358 = vrot.lane.b32.xlu2 %v1343_v33, %s2156_s3 }
 0x433   :  { %v1189_v3 = vpop.f32.mrf.mxu1 }
 0x434   :  { %1204 = vrot.lane.b32.xlu0 %v1189_v3, %s2157_s20 }
 0x439   :  { %v1346_v18 = vpop.f32.mrf.mxu2 }
 0x43a   :  { %1052 = vrot.lane.b32.xlu2 %v1038_v35, %s2158_s21 }
 0x441   :  { %v301_v37 = vpop.f32.mrf.mxu3  ;;  %v1349_v0 = vpop.f32.mrf.mxu2 }
 0x442   :  { %309 = vst.msk [vmem:[#allocation2 + $0x20] sm:$0xff] %vm221_vm3, %v301_v37  ;;  %1360 = vrot.lane.b32.xlu2 %v1346_v18, %s2156_s3  ;;  %1362 = vrot.lane.b32.xlu1 %v1349_v0, %s2156_s3 }
 0x443   :  { %468 = vst.msk [vmem:[#allocation2 + $0x20] sm:$0xff] %vm465_vm5, %v458_v56  ;;  %v1192_v13 = vpop.f32.mrf.mxu1  ;;  %v768_v12 = vpop.permute.xlu1 %767 }
 0x444   :  { %623 = vst.msk [vmem:[#allocation2 + $0x20] sm:$0xff] %vm620_vm6, %v613_v1  ;;  %1206 = vrot.lane.b32.xlu0 %v1192_v13, %s2157_s20 }
 0x445   :  { %778 = vst.msk [vmem:[#allocation2 + $0x20] sm:$0xff] %vm775_vm7, %v768_v12  ;;  %v615_v41 = vpop.permute.xlu0 %614 }
 0x44a   :  { %1054 = vrot.lane.b32.xlu2 %v1041_v7, %s2158_s21 }
 0x44b   :  { %v460_v21 = vpop.permute.xlu1 %459 }
 0x44c   :  { %v1376_v54 = vld [vmem:[#allocation2 + $0x20] sm:$0xff] }
 0x44d   :  { %v1390_v16 = vadd.f32 %v3037_v27, %v1376_v54  ;;  %v1049_v36 = vpop.permute.xlu0 %1048 }
 0x44f   :  { %v1410_v4 = vmul.f32 1.442695, %v1390_v16  ;;  %v1357_v49 = vpop.permute.xlu2 %1356  ;;  %vm1398_vm0 = vcmp.gt.f32.partialorder %v1390_v16, 0.0 }
 0x451   :  { %v304_v2 = vpop.f32.mrf.mxu3  ;;  %2116 = vpow2.f32 %v1410_v4  ;;  %v1983_v4 = vld [vmem:[#allocation4] ss:$0 sm:$0xff] }
 0x452   :  { %310 = vst.msk [vmem:[#allocation2 + $0x30] sm:$0xff] %vm221_vm3, %v304_v2 }
 0x453   :  { %469 = vst.msk [vmem:[#allocation2 + $0x30] sm:$0xff] %vm465_vm5, %v460_v21  ;;  %v1195_v20 = vpop.f32.mrf.mxu1  ;;  %v770_v26 = vpop.permute.xlu1 %769  ;;  %v1636_v21 = vld [vmem:[#allocation3] sm:$0x1] }
 0x454   :  { %624 = vst.msk [vmem:[#allocation2 + $0x30] sm:$0xff] %vm620_vm6, %v615_v41  ;;  %1208 = vrot.lane.b32.xlu0 %v1195_v20, %s2157_s20  ;;  %1639 = vperm.xlu2 %1982, %v1636_v21  }
 0x455   :  { %779 = vst.msk [vmem:[#allocation2 + $0x30] sm:$0xff] %vm775_vm7, %v770_v26 }
 0x457   :  { %v2117_v6 = vpop.eup %2116  ;;  %v1051_v51 = vpop.permute.xlu2 %1050 }
 0x458   :  { %v1826_v32 = vadd.f32 -1.0, %v2117_v6 }
 0x459   :  { %v890_v10 = vpop.f32.mrf.mxu3 }
 0x45a   :  { %902 = vst.msk [vmem:[#allocation2 + $0x8] sm:$0xff] %vm221_vm3, %v890_v10  ;;  %v1430_v61 = vsel %vm1398_vm0, %v1390_v16, %v1826_v32 }
 0x45b   :  { %1060 = vst.msk [vmem:[#allocation2 + $0x8] sm:$0xff] %vm465_vm5, %v1049_v36  ;;  %1488 = vmatmul.f32.gmra.mxu3 %v1430_v61 }
 0x45c   :  { %v1378_v53 = vld [vmem:[#allocation2 + $0x30] sm:$0xff] }
 0x45d   :  { %v1203_v9 = vpop.permute.xlu0 %1202  ;;  %v1392_v52 = vadd.f32 %v3037_v27, %v1378_v53 }
 0x45e   :  { %1214 = vst.msk [vmem:[#allocation2 + $0x8] sm:$0xff] %vm620_vm6, %v1203_v9 }
 0x45f   :  { %1368 = vst.msk [vmem:[#allocation2 + $0x8] sm:$0xff] %vm775_vm7, %v1357_v49  ;;  %v1414_v14 = vmul.f32 1.442695, %v1392_v52  ;;  %vm1400_vm10 = vcmp.gt.f32.partialorder %v1392_v52, 0.0 }
 0x461   :  { %v893_v60 = vpop.f32.mrf.mxu3  ;;  %2118 = vpow2.f32 %v1414_v14 }
 0x462   :  { %903 = vst.msk [vmem:[#allocation2 + $0x18] sm:$0xff] %vm221_vm3, %v893_v60 }
 0x463   :  { %1061 = vst.msk [vmem:[#allocation2 + $0x18] sm:$0xff] %vm465_vm5, %v1051_v51 }
 0x466   :  { %v1373_v25 = vld [vmem:[#allocation2 + $0x8] sm:$0xff] }
 0x467   :  { %v2119_v63 = vpop.eup %2118  ;;  %v1387_v23 = vadd.f32 %v1383_v42, %v1373_v25 }
 0x468   :  { %v1828_v39 = vadd.f32 -1.0, %v2119_v63 }
 0x469   :  { %v896_v50 = vpop.f32.mrf.mxu3  ;;  %v1404_v27 = vmul.f32 1.442695, %v1387_v23  ;;  %vm1395_vm11 = vcmp.gt.f32.partialorder %v1387_v23, 0.0 }
 0x46a   :  { %904 = vst.msk [vmem:[#allocation2 + $0x28] sm:$0xff] %vm221_vm3, %v896_v50  ;;  %v1432_v22 = vsel %vm1400_vm10, %v1392_v52, %v1828_v39  ;;  %v2144_v50 = vld [vmem:[%s3181_s2 + $0x8] sm:$0xff] }
 0x46b   :  { %1491 = vmatmul.f32.gmra.mxu3 %v1432_v22  ;;  %1600 = vmatpush.xpose.msra.mxu1 %v1432_v22  ;;  %2120 = vpow2.f32 %v1404_v27 }
 0x46f   :  { %1601 = vmatpush.xpose.msra.mxu1 %v1430_v61 }
 0x471   :  { %v2121_v48 = vpop.eup %2120  ;;  %v899_v38 = vpop.f32.mrf.mxu3 }
 0x472   :  { %905 = vst.msk [vmem:[#allocation2 + $0x38] sm:$0xff] %vm221_vm3, %v899_v38  ;;  %v1823_v28 = vadd.f32 -1.0, %v2121_v48 }
 0x473   :  { %1602 = vmatpush.xpose.msra.mxu1 %v3047_v58 }
 0x474   :  { %v1427_v19 = vsel %vm1395_vm11, %v1387_v23, %v1823_v28 }
 0x475   :  { %1511 = vmatmul.f32.vlgmr.msrb.gmra.mxu0 %v1427_v19 }
 0x477   :  { %1603 = vmatpush.xpose.msra.mxu1 %v3043_v11 }
 0x47a   :  { %1857 = vmatmul.lmr.bf16.vlgmr.msra.gmra.1.mxu1 }
 0x48c   :  { %v1359_v30 = vpop.permute.xlu2 %1358 }
 0x494   :  { %v1053_v44 = vpop.permute.xlu2 %1052 }
 0x495   :  { %1062 = vst.msk [vmem:[#allocation2 + $0x28] sm:$0xff] %vm465_vm5, %v1053_v44 }
 0x49c   :  { %v1361_v46 = vpop.permute.xlu2 %1360  ;;  %v1483_v62 = vpop.f32.mrf.mxu3 }
 0x4a4   :  { %v1055_v33 = vpop.permute.xlu2 %1054 }
 0x4a5   :  { %1063 = vst.msk [vmem:[#allocation2 + $0x38] sm:$0xff] %vm465_vm5, %v1055_v33  ;;  %vm1771_vm5 = vcmask 253952  }
 0x4a6   :  { %v1205_v3 = vpop.permute.xlu0 %1204 }
 0x4a7   :  { %1215 = vst.msk [vmem:[#allocation2 + $0x18] sm:$0xff] %vm620_vm6, %v1205_v3 }
 0x4a8   :  { %1369 = vst.msk [vmem:[#allocation2 + $0x18] sm:$0xff] %vm775_vm7, %v1359_v30  ;;  %v2145_v30 = vld [vmem:[%s3181_s2 + $0x10] sm:$0xff] }
 0x4aa   :  { %v1486_v57 = vpop.f32.mrf.mxu3 }
 0x4ae   :  { %v1640_v52 = vpop.permute.xlu2 %1639 }
 0x4af   :  { %v1375_v58 = vld [vmem:[#allocation2 + $0x18] sm:$0xff]  ;;  %v1642_v14 = vperm.slane %v1640_v52, 0 }
 0x4b0   :  { %v1389_v47 = vadd.f32 %v1383_v42, %v1375_v58 }
 0x4b2   :  { %v1408_v59 = vmul.f32 1.442695, %v1389_v47  ;;  %vm1397_vm12 = vcmp.gt.f32.partialorder %v1389_v47, 0.0 }
 0x4b4   :  { %2122 = vpow2.f32 %v1408_v59  ;;  %v1363_v37 = vpop.permute.xlu1 %1362 }
 0x4b6   :  { %v1207_v35 = vpop.permute.xlu0 %1206 }
 0x4b7   :  { %1216 = vst.msk [vmem:[#allocation2 + $0x28] sm:$0xff] %vm620_vm6, %v1207_v35 }
 0x4b8   :  { %1370 = vst.msk [vmem:[#allocation2 + $0x28] sm:$0xff] %vm775_vm7, %v1361_v46 }
 0x4ba   :  { %v2123_v11 = vpop.eup %2122 }
 0x4bb   :  { %v1825_v18 = vadd.f32 -1.0, %v2123_v11 }
 0x4bd   :  { %v1429_v5 = vsel %vm1397_vm12, %v1389_v47, %v1825_v18  ;;  %v2146_v18 = vld [vmem:[%s3181_s2 + $0x18] sm:$0xff] }
 0x4be   :  { %1514 = vmatmul.f32.gmra.mxu0 %v1429_v5 }
 0x4bf   :  { %v1377_v56 = vld [vmem:[#allocation2 + $0x28] sm:$0xff] }
 0x4c0   :  { %v1391_v24 = vadd.f32 %v1383_v42, %v1377_v56 }
 0x4c2   :  { %v1412_v55 = vmul.f32 1.442695, %v1391_v24  ;;  %vm1399_vm13 = vcmp.gt.f32.partialorder %v1391_v24, 0.0 }
 0x4c4   :  { %2124 = vpow2.f32 %v1412_v55  ;;  %v2147_v55 = vld [vmem:[%s3181_s2] sm:$0xff] }
 0x4c6   :  { %v1209_v34 = vpop.permute.xlu0 %1208 }
 0x4c7   :  { %1217 = vst.msk [vmem:[#allocation2 + $0x38] sm:$0xff] %vm620_vm6, %v1209_v34 }
 0x4c8   :  { %1371 = vst.msk [vmem:[#allocation2 + $0x38] sm:$0xff] %vm775_vm7, %v1363_v37 }
 0x4ca   :  { %v2125_v0 = vpop.eup %2124 }
 0x4cb   :  { %v1827_v1 = vadd.f32 -1.0, %v2125_v0 }
 0x4cd   :  { %v1431_v13 = vsel %vm1399_vm13, %v1391_v24, %v1827_v1 }
 0x4ce   :  { %1517 = vmatmul.f32.gmra.mxu0 %v1431_v13 }
 0x4cf   :  { %v1379_v12 = vld [vmem:[#allocation2 + $0x38] sm:$0xff] }
 0x4d0   :  { %v1393_v8 = vadd.f32 %v1383_v42, %v1379_v12 }
 0x4d2   :  { %v1416_v40 = vmul.f32 1.442695, %v1393_v8  ;;  %vm1401_vm14 = vcmp.gt.f32.partialorder %v1393_v8, 0.0 }
 0x4d4   :  { %2126 = vpow2.f32 %v1416_v40 }
 0x4da   :  { %v2127_v7 = vpop.eup %2126 }
 0x4db   :  { %v1829_v43 = vadd.f32 -1.0, %v2127_v7 }
 0x4dd   :  { %v1433_v41 = vsel %vm1401_vm14, %v1393_v8, %v1829_v43  ;;  %v20_v8 = vstv %s3186_s10 }
 0x4de   :  { %1520 = vmatmul.f32.gmra.mxu0 %v1433_v41  ;;  %1620 = vmatpush.xpose.msra.mxu2 %v1433_v41  ;;  %v1489_v17 = vpop.f32.mrf.mxu3  ;;  %21 = vst [vmem:[#allocation5] sm:$0x1] %v20_v8 }
 0x4e2   :  { %1621 = vmatpush.xpose.msra.mxu2 %v1431_v13 }
 0x4e6   :  { %1622 = vmatpush.xpose.msra.mxu2 %v1429_v5 }
 0x4ea   :  { %1623 = vmatpush.xpose.msra.mxu2 %v1427_v19 }
 0x4ed   :  { %1878 = vmatmul.lmr.bf16.vlgmr.msra.gmra.1.mxu2 }
 0x4ee   :  { %v1492_v49 = vpop.f32.mrf.mxu3 }
 0x4f2   :  { %v1512_v54 = vpop.f32.mrf.mxu0 }
 0x4f3   :  { %v1513_v36 = vadd.f32 %v1512_v54, %v1483_v62 }
 0x4f5   :  { %v1632_v6 = vmul.f32 %v1983_v4, %v1513_v36 }
 0x4f7   :  { %v1605_v53 = vpop.f32.mrf.mxu1 }
 0x53b   :  { %v1515_v16 = vpop.f32.mrf.mxu0 }
 0x53c   :  { %v1516_v31 = vadd.f32 %v1515_v16, %v1486_v57 }
 0x53e   :  { %v1633_v2 = vmul.f32 %v1983_v4, %v1516_v31 }
 0x540   :  { %1651 = vperm.xlu2 %1982, %v1633_v2  }
 0x54b   :  { %v1518_v20 = vpop.f32.mrf.mxu0 }
 0x54c   :  { %v1519_v26 = vadd.f32 %v1518_v20, %v1489_v17  ;;  %v1729_v20 = vld [vmem:[#allocation5] sm:$0x1] }
 0x54e   :  { %v1634_v45 = vmul.f32 %v1983_v4, %v1519_v26 }
 0x550   :  { %1656 = vperm.xlu1 %1920, %v1634_v45  }
 0x558   :  { %1646 = vperm.xlu1 %1920, %v1632_v6  }
 0x55b   :  { %v1521_v32 = vpop.f32.mrf.mxu0 }
 0x55c   :  { %v1522_v10 = vadd.f32 %v1521_v32, %v1492_v49 }
 0x55e   :  { %v1635_v61 = vmul.f32 %v1983_v4, %v1522_v10 }
 0x560   :  { %1661 = vperm.xlu0 %1926, %v1635_v61  }
 0x570   :  { %v1625_v9 = vpop.f32.mrf.mxu2 }
 0x571   :  { %v3141_v60 = vadd.f32 %v1625_v9, %v1605_v53 }
 0x573   :  { %v1643_v51 = vmul.f32 %v1642_v14, %v3141_v60 }
 0x575   :  { %v1664_v42 = vperm.slane %v1643_v51, 0 }
 0x59a   :  { %v1652_v25 = vpop.permute.xlu2 %1651 }
 0x59b   :  { %v1666_v63 = vadd.f32 %v1664_v42, %v1652_v25 }
 0x59d   :  { %vm1670_vm15 = vcmp.ge.f32.partialorder %v1666_v63, 0.0  ;;  %v1674_v23 = vmul.f32 0.2, %v1666_v63 }
 0x59f   :  { %v1678_v39 = vsel %vm1670_vm15, %v1666_v63, %v1674_v23 }
 0x5a0   :  { %v1682_v27 = vadd.f32 %v2144_v50, %v1678_v39 }
 0x5a2   :  { %v1688_v22 = vsel %vm221_vm3, %v1682_v27, -inf }
 0x5a3   :  { %1689 = vmax.xlane.f32.xlu1 %v1688_v22 }
 0x5c2   :  { %v1657_v48 = vpop.permute.xlu1 %1656 }
 0x5c3   :  { %v1667_v38 = vadd.f32 %v1664_v42, %v1657_v48 }
 0x5c5   :  { %vm1671_vm1 = vcmp.ge.f32.partialorder %v1667_v38, 0.0  ;;  %v1675_v28 = vmul.f32 0.2, %v1667_v38 }
 0x5c7   :  { %v1679_v19 = vsel %vm1671_vm1, %v1667_v38, %v1675_v28 }
 0x5c8   :  { %v1683_v44 = vadd.f32 %v2145_v30, %v1679_v19 }
 0x5ca   :  { %v1691_v46 = vsel %vm221_vm3, %v1683_v44, -inf  ;;  %v1647_v33 = vpop.permute.xlu1 %1646 }
 0x5cb   :  { %1692 = vmax.xlane.f32.xlu0 %v1691_v46  ;;  %v1665_v58 = vadd.f32 %v1664_v42, %v1647_v33 }
 0x5cd   :  { %v1673_v35 = vmul.f32 0.2, %v1665_v58  ;;  %vm1669_vm4 = vcmp.ge.f32.partialorder %v1665_v58, 0.0 }
 0x5cf   :  { %v1677_v24 = vsel %vm1669_vm4, %v1665_v58, %v1673_v35 }
 0x5d0   :  { %v1681_v34 = vadd.f32 %v2147_v55, %v1677_v24 }
 0x5d2   :  { %v1662_v3 = vpop.permute.xlu0 %1661  ;;  %v1685_v37 = vsel %vm221_vm3, %v1681_v34, -inf }
 0x5d3   :  { %v1668_v47 = vadd.f32 %v1664_v42, %v1662_v3 }
 0x5d5   :  { %vm1672_vm2 = vcmp.ge.f32.partialorder %v1668_v47, 0.0  ;;  %v1676_v59 = vmul.f32 0.2, %v1668_v47 }
 0x5d7   :  { %v1680_v11 = vsel %vm1672_vm2, %v1668_v47, %v1676_v59 }
 0x5d8   :  { %v1684_v5 = vadd.f32 %v2146_v18, %v1680_v11 }
 0x5da   :  { %v1694_v56 = vsel %vm221_vm3, %v1684_v5, -inf }
 0x5db   :  { %1695 = vmax.xlane.f32.xlu2 %v1694_v56 }
 0x5e3   :  { %1686 = vmax.xlane.f32.xlu2 %v1685_v37 }
 0x616   :  { %v1690_v0 = vpop.xlane.xlu1 %1689 }
 0x617   :  { %v1698_v1 = vsub.f32 %v1682_v27, %v1690_v0 }
 0x619   :  { %v1703_v29 = vmul.f32 1.442695, %v1698_v1 }
 0x61b   :  { %2128 = vpow2.f32 %v1703_v29 }
 0x621   :  { %v2129_v13 = vpop.eup %2128 }
 0x622   :  { %v1712_v12 = vsel %vm221_vm3, %v2129_v13, 0.0 }
 0x623   :  { %1713 = vadd.xlane.f32.xlu2 %v1712_v12 }
 0x63e   :  { %v1693_v40 = vpop.xlane.xlu0 %1692 }
 0x63f   :  { %v1699_v15 = vsub.f32 %v1683_v44, %v1693_v40 }
 0x641   :  { %v1705_v7 = vmul.f32 1.442695, %v1699_v15 }
 0x643   :  { %2130 = vpow2.f32 %v1705_v7 }
 0x649   :  { %v2131_v43 = vpop.eup %2130 }
 0x64a   :  { %v1715_v41 = vsel %vm221_vm3, %v2131_v43, 0.0 }
 0x64b   :  { %1716 = vadd.xlane.f32.xlu1 %v1715_v41 }
 0x64e   :  { %v1696_v21 = vpop.xlane.xlu2 %1695 }
 0x64f   :  { %v1700_v62 = vsub.f32 %v1684_v5, %v1696_v21 }
 0x651   :  { %v1707_v54 = vmul.f32 1.442695, %v1700_v62 }
 0x653   :  { %2132 = vpow2.f32 %v1707_v54 }
 0x656   :  { %v1687_v57 = vpop.xlane.xlu2 %1686 }
 0x657   :  { %v1697_v16 = vsub.f32 %v1681_v34, %v1687_v57 }
 0x659   :  { %v2133_v4 = vpop.eup %2132  ;;  %v1701_v31 = vmul.f32 1.442695, %v1697_v16 }
 0x65a   :  { %v1718_v2 = vsel %vm221_vm3, %v2133_v4, 0.0 }
 0x65b   :  { %2134 = vpow2.f32 %v1701_v31  ;;  %1719 = vadd.xlane.f32.xlu0 %v1718_v2 }
 0x661   :  { %v2135_v17 = vpop.eup %2134 }
 0x662   :  { %v1709_v26 = vsel %vm221_vm3, %v2135_v17, 0.0 }
 0x663   :  { %1710 = vadd.xlane.f32.xlu0 %v1709_v26 }
 0x664   :  { %1732 = vperm.xlu1 %1920, %v1729_v20  }
 0x696   :  { %v1714_v6 = vpop.xlane.xlu2 %1713 }
 0x6be   :  { %v1717_v45 = vpop.xlane.xlu1 %1716 }
 0x6ce   :  { %v1720_v36 = vpop.xlane.xlu0 %1719 }
 0x6cf   :  { %2136 = vrcp.f32 %v1720_v36 }
 0x6d0   :  { %2138 = vrcp.f32 %v1717_v45 }
 0x6d1   :  { %2140 = vrcp.f32 %v1714_v6 }
 0x6d5   :  { %v2137_v49 = vpop.eup %2136 }
 0x6d6   :  { %v1728_v32 = vmul.f32 %v2137_v49, %v2133_v4  ;;  %v1711_v10 = vpop.xlane.xlu0 %1710  ;;  %v2139_v61 = vpop.eup %2138 }
 0x6d7   :  { %2142 = vrcp.f32 %v1711_v10  ;;  %v1727_v53 = vmul.f32 %v2139_v61, %v2131_v43  ;;  %v2141_v9 = vpop.eup %2140  ;;  %v1733_v42 = vpop.permute.xlu1 %1732 }
 0x6d8   :  { %1830 = vmatpush.xpose.msk.msra.mxu3 %vm221_vm3, %v1728_v32  ;;  %v1726_v52 = vmul.f32 %v2141_v9, %v2129_v13  ;;  %v1735_v25 = vperm.slane %v1733_v42, 0 }
 0x6dc   :  { %1831 = vmatpush.xpose.msk.msra.mxu3 %vm221_vm3, %v1727_v53 }
 0x6dd   :  { %v2143_v14 = vpop.eup %2142 }
 0x6de   :  { %v1725_v51 = vmul.f32 %v2143_v14, %v2135_v17 }
 0x6e0   :  { %1832 = vmatpush.xpose.msk.msra.mxu3 %vm221_vm3, %v1726_v52 }
 0x6e4   :  { %1833 = vmatpush.xpose.msk.msra.mxu3 %vm221_vm3, %v1725_v51 }
 0x6e7   :  { %1834 = vmatmul.msk.f32.vlgmr.msra.gmra.mxu3 %vm221_vm3, %v3141_v60 }
 0x76a   :  { %v1768_v63 = vpop.f32.mrf.mxu3 }
 0x76b   :  { %v1769_v23 = vadd.f32 %v1768_v63, %v1735_v25 }
 0x76d   :  { %1772 = vst.msk [vmem:[%s3187_s11] sm:$0x1] %vm1771_vm5, %v1769_v23 }

</bundles_post_ra>
